<compile_context>
chip_gen: v7x
topology: tpu7x:2x2x1
jax: 0.10.0
libtpu: 0.0.40
codegen_flags: <defaults>
</compile_context>

<pallas_src>
import functools

import jax
import jax.numpy as jnp
from jax.experimental import pallas as pl
from jax.experimental.pallas import tpu as pltpu


# ----------------------------- Pallas kernel ------------------------------ #

def _gru_net_kernel(x2d_ref, w_ref, b_ref, out_ref, *, B, S, D, H):
    f32 = jnp.float32

    # Row offsets of each per-gate weight block inside the packed slab.  All offsets
    # are static multiples of 8 (sublane-aligned) and every block sits at lane 0.
    offs = {}
    row = 0
    for name, nrows in (("wih1_r", D), ("wih1_z", D), ("wih1_n", D),
                        ("whh1_r", H), ("whh1_z", H), ("whh1_n", H),
                        ("wih2_r", H), ("wih2_z", H), ("wih2_n", H),
                        ("whh2_r", H), ("whh2_z", H), ("whh2_n", H),
                        ("wfc", H)):
        offs[name] = (row, nrows)
        row += nrows

    def w(name):
        # Contiguous, statically-offset load of one weight block (cheap vlds; loading
        # at the use site keeps the register file free for the hoisted projections).
        r0, nr = offs[name]
        return w_ref[r0:r0 + nr, :]

    def b(i):
        return b_ref[i:i + 1, :]                       # (1, H) bias row

    def bb(i):
        return jnp.broadcast_to(b(i), (B, H))          # broadcast once, before the loop

    # In-loop biases, hoisted and pre-broadcast (JAX does not CSE broadcast_in_dim).
    bhh1_n = bb(3)
    b2_r = bb(4)
    b2_z = bb(5)
    b2_n = bb(6)
    bhh2_n = bb(7)

    # Hoisted layer-1 input projection for ALL timesteps, per gate, off the recurrence
    # critical path.  Rows are time-major (row = t*B + b); values stay in vregs.
    # Rows 0/1 of the bias slab already fold b_hh for the r/z gates.
    x2d = x2d_ref[...]                                                   # (S*B, D)
    gi1_r = jnp.dot(x2d, w("wih1_r"), preferred_element_type=f32) + b(0)
    gi1_z = jnp.dot(x2d, w("wih1_z"), preferred_element_type=f32) + b(1)
    gi1_n = jnp.dot(x2d, w("wih1_n"), preferred_element_type=f32) + b(2)

    h1 = jnp.zeros((B, H), f32)
    h2 = jnp.zeros((B, H), f32)

    # Static unroll over time (S is small and known at trace time).
    for t in range(S):
        lo = t * B

        # Layer-2 hidden projection depends only on h2(t-1): issue it ahead of the
        # layer-1 nonlinearities so its MXU latency overlaps layer-1's EUP work.
        gh2_r = jnp.dot(h2, w("whh2_r"), preferred_element_type=f32)
        gh2_z = jnp.dot(h2, w("whh2_z"), preferred_element_type=f32)
        gh2_n = jnp.dot(h2, w("whh2_n"), preferred_element_type=f32)

        # ---- layer 1 (PyTorch GRU gate order r, z, n) ----
        gh1_r = jnp.dot(h1, w("whh1_r"), preferred_element_type=f32)
        gh1_z = jnp.dot(h1, w("whh1_z"), preferred_element_type=f32)
        gh1_n = jnp.dot(h1, w("whh1_n"), preferred_element_type=f32)
        r1 = jax.nn.sigmoid(gi1_r[lo:lo + B, :] + gh1_r)
        z1 = jax.nn.sigmoid(gi1_z[lo:lo + B, :] + gh1_z)
        n1 = jnp.tanh(gi1_n[lo:lo + B, :] + r1 * (gh1_n + bhh1_n))
        h1 = n1 + z1 * (h1 - n1)                         # (1-z)*n + z*h

        # ---- layer 2 (inter-layer dropout is identity at inference) ----
        gi2_r = jnp.dot(h1, w("wih2_r"), preferred_element_type=f32) + b2_r
        gi2_z = jnp.dot(h1, w("wih2_z"), preferred_element_type=f32) + b2_z
        gi2_n = jnp.dot(h1, w("wih2_n"), preferred_element_type=f32) + b2_n
        r2 = jax.nn.sigmoid(gi2_r + gh2_r)
        z2 = jax.nn.sigmoid(gi2_z + gh2_z)
        n2 = jnp.tanh(gi2_n + r2 * (gh2_n + bhh2_n))
        h2 = n2 + z2 * (h2 - n2)

    # TODO(synk): dropout on the last hidden state is implemented as inference-mode
    # identity (no RNG masking), matching PyTorch eval() forward semantics.
    # FC weight/bias are lane-padded to H inside the slabs; only the first 2 lanes
    # carry real logits, so slice (offset-0 lane slice) before the softmax.
    logits = (jnp.dot(h2, w("wfc"), preferred_element_type=f32) + b(8))[:, :2]
    m = jnp.max(logits, axis=1, keepdims=True)
    e = jnp.exp(logits - m)
    out_ref[...] = e / jnp.sum(e, axis=1, keepdims=True)


# ------------------------ One-time parameter prep -------------------------- #

def prepare_gru_net_params(p, *, input_dim, hidden_dim):
    """Split per gate, fold r/z hidden biases, pack into 2 slabs. Call once."""
    D, H = input_dim, hidden_dim
    f32 = jnp.float32

    def split3(a):
        return a[:, :H], a[:, H:2 * H], a[:, 2 * H:]

    wih1_r, wih1_z, wih1_n = split3(p["wih1_t"])
    whh1_r, whh1_z, whh1_n = split3(p["whh1_t"])
    wih2_r, wih2_z, wih2_n = split3(p["wih2_t"])
    whh2_r, whh2_z, whh2_n = split3(p["whh2_t"])
    bih1_r, bih1_z, bih1_n = split3(p["bih1"])
    bhh1_r, bhh1_z, bhh1_n = split3(p["bhh1"])
    bih2_r, bih2_z, bih2_n = split3(p["bih2"])
    bhh2_r, bhh2_z, bhh2_n = split3(p["bhh2"])

    wfc_pad = jnp.zeros((H, H), f32).at[:, :2].set(p["wfc_t"].astype(f32))
    bfc_pad = jnp.zeros((1, H), f32).at[:, :2].set(p["bfc"].astype(f32))

    w_slab = jnp.concatenate(
        [wih1_r, wih1_z, wih1_n,
         whh1_r, whh1_z, whh1_n,
         wih2_r, wih2_z, wih2_n,
         whh2_r, whh2_z, whh2_n,
         wfc_pad], axis=0).astype(f32)          # (3D + 10H, H)

    b_slab = jnp.concatenate(
        [bih1_r + bhh1_r,      # 0: layer-1 r bias (b_hr folded into input proj)
         bih1_z + bhh1_z,      # 1: layer-1 z bias (b_hz folded)
         bih1_n,               # 2: layer-1 n input bias
         bhh1_n,               # 3: layer-1 n hidden bias (stays inside r*(gh_n + b))
         bih2_r + bhh2_r,      # 4: layer-2 r bias
         bih2_z + bhh2_z,      # 5: layer-2 z bias
         bih2_n,               # 6: layer-2 n input bias
         bhh2_n,               # 7: layer-2 n hidden bias
         bfc_pad], axis=0).astype(f32)          # (9, H)

    return {"w_slab": w_slab, "b_slab": b_slab,
            "input_dim": D, "hidden_dim": H}


# ------------------------------- Wrapper ----------------------------------- #

def gru_net_forward(x, prepped):
    """x: (batch, seq, input_dim) float32. Returns softmax probs (batch, 2)."""
    B, S, D = x.shape
    H = prepped["hidden_dim"]
    assert D == prepped["input_dim"]

    # Time-major layout: row = t*B + b, so each timestep's (B, :) slab of the hoisted
    # projection is a contiguous, sublane-aligned slice. Transpose is free at this size.
    x2d = jnp.transpose(x, (1, 0, 2)).reshape(S * B, D)

    vmem = pl.BlockSpec(memory_space=pltpu.MemorySpace.VMEM)
    kernel = functools.partial(_gru_net_kernel, B=B, S=S, D=D, H=H)

    # Single kernel invocation (no grid): the whole problem fits in VMEM, and the
    # recurrence is a serial chain anyway.  v7x note: at B=8 one TensorCore is used;
    # if batch grows, add a leading batch-split "parallel" grid axis.
    return pl.pallas_call(
        kernel,
        out_shape=jax.ShapeDtypeStruct((B, 2), jnp.float32),
        in_specs=[vmem, vmem, vmem],
        out_specs=vmem,
    )(x2d, prepped["w_slab"], prepped["b_slab"])


# --------------------------- Pure-JAX reference ----------------------------- #

def ref_forward(x, p):
    H = p["whh1_t"].shape[0]
    B = x.shape[0]

    def cell(h, x_t, wih_t, whh_t, bih, bhh):
        gi = x_t @ wih_t + bih
        gh = h @ whh_t + bhh
        i_r, i_z, i_n = gi[:, :H], gi[:, H:2 * H], gi[:, 2 * H:]
        h_r, h_z, h_n = gh[:, :H], gh[:, H:2 * H], gh[:, 2 * H:]
        r = jax.nn.sigmoid(i_r + h_r)
        z = jax.nn.sigmoid(i_z + h_z)
        n = jnp.tanh(i_n + r * h_n)
        return (1.0 - z) * n + z * h

    def step(carry, x_t):
        h1, h2 = carry
        h1 = cell(h1, x_t, p["wih1_t"], p["whh1_t"], p["bih1"], p["bhh1"])
        h2 = cell(h2, h1, p["wih2_t"], p["whh2_t"], p["bih2"], p["bhh2"])
        return (h1, h2), None

    h0 = (jnp.zeros((B, H), jnp.float32), jnp.zeros((B, H), jnp.float32))
    (h1, h2), _ = jax.lax.scan(step, h0, jnp.transpose(x, (1, 0, 2)))
    logits = h2 @ p["wfc_t"] + p["bfc"]
    return jax.nn.softmax(logits, axis=1)


# ---------------------------------- Main ------------------------------------ #

if __name__ == "__main__":
    B, S, D, H = 8, 8, 16, 32

    key = jax.random.PRNGKey(0)
    keys = jax.random.split(key, 12)
    k = 1.0 / jnp.sqrt(jnp.float32(H))  # PyTorch-style uniform(-1/sqrt(H), 1/sqrt(H))

    def u(kk, shape):
        return jax.random.uniform(kk, shape, jnp.float32, -k, k)

    # Weights stored pre-transposed for x @ W.T convention (gate order r, z, n).
    params = {
        "wih1_t": u(keys[0], (D, 3 * H)),
        "whh1_t": u(keys[1], (H, 3 * H)),
        "bih1":   u(keys[2], (1, 3 * H)),
        "bhh1":   u(keys[3], (1, 3 * H)),
        "wih2_t": u(keys[4], (H, 3 * H)),
        "whh2_t": u(keys[5], (H, 3 * H)),
        "bih2":   u(keys[6], (1, 3 * H)),
        "bhh2":   u(keys[7], (1, 3 * H)),
        "wfc_t":  u(keys[8], (H, 2)),
        "bfc":    u(keys[9], (1, 2)),
    }

    x = jax.random.normal(keys[10], (B, S, D), jnp.float32)

    # One-time parameter preparation (splitting / folding / packing happens here,
    # not per forward call).
    prepped = jax.tree_util.tree_map(jax.block_until_ready,
                                     prepare_gru_net_params(params,
                                                            input_dim=D,
                                                            hidden_dim=H))

    out = gru_net_forward(x, prepped)
    out = jax.block_until_ready(out)

    ref = jax.block_until_ready(ref_forward(x, params))
    assert out.shape == (B, 2)
    assert jnp.allclose(out, ref, atol=1e-5, rtol=1e-5), (
        f"max abs err {jnp.max(jnp.abs(out - ref))}")
    assert jnp.allclose(jnp.sum(out, axis=1), jnp.ones((B,)), atol=1e-5)

    print("KERNEL_OK")
</pallas_src>

<mosaic_0001>
module attributes {stable_mosaic.version = 11 : i64} {
  func.func @_gru_net_kernel(%arg0: memref<64x16xf32, #tpu.memory_space<vmem>>, %arg1: memref<368x32xf32, #tpu.memory_space<vmem>>, %arg2: memref<9x32xf32, #tpu.memory_space<vmem>>, %arg3: memref<8x2xf32, #tpu.memory_space<vmem>>) attributes {dimension_semantics = [], scalar_prefetch = 0 : i64, scratch_operands = 0 : i64, tpu.core_type = #tpu.core_type<tc>} {
    %c3 = arith.constant 3 : index
    %c0 = arith.constant 0 : index
    %0 = vector.load %arg2[%c3, %c0] : memref<9x32xf32, #tpu.memory_space<vmem>>, vector<1x32xf32>
    %1 = vector.shape_cast %0 : vector<1x32xf32> to vector<1x32xf32>
    %2 = vector.broadcast %1 : vector<1x32xf32> to vector<8x32xf32>
    %c4 = arith.constant 4 : index
    %c0_0 = arith.constant 0 : index
    %3 = vector.load %arg2[%c4, %c0_0] : memref<9x32xf32, #tpu.memory_space<vmem>>, vector<1x32xf32>
    %4 = vector.shape_cast %3 : vector<1x32xf32> to vector<1x32xf32>
    %5 = vector.broadcast %4 : vector<1x32xf32> to vector<8x32xf32>
    %c5 = arith.constant 5 : index
    %c0_1 = arith.constant 0 : index
    %6 = vector.load %arg2[%c5, %c0_1] : memref<9x32xf32, #tpu.memory_space<vmem>>, vector<1x32xf32>
    %7 = vector.shape_cast %6 : vector<1x32xf32> to vector<1x32xf32>
    %8 = vector.broadcast %7 : vector<1x32xf32> to vector<8x32xf32>
    %c6 = arith.constant 6 : index
    %c0_2 = arith.constant 0 : index
    %9 = vector.load %arg2[%c6, %c0_2] : memref<9x32xf32, #tpu.memory_space<vmem>>, vector<1x32xf32>
    %10 = vector.shape_cast %9 : vector<1x32xf32> to vector<1x32xf32>
    %11 = vector.broadcast %10 : vector<1x32xf32> to vector<8x32xf32>
    %c7 = arith.constant 7 : index
    %c0_3 = arith.constant 0 : index
    %12 = vector.load %arg2[%c7, %c0_3] : memref<9x32xf32, #tpu.memory_space<vmem>>, vector<1x32xf32>
    %13 = vector.shape_cast %12 : vector<1x32xf32> to vector<1x32xf32>
    %14 = vector.broadcast %13 : vector<1x32xf32> to vector<8x32xf32>
    %c0_4 = arith.constant 0 : index
    %c0_5 = arith.constant 0 : index
    %15 = vector.load %arg0[%c0_4, %c0_5] : memref<64x16xf32, #tpu.memory_space<vmem>>, vector<64x16xf32>
    %c0_6 = arith.constant 0 : index
    %c0_7 = arith.constant 0 : index
    %16 = vector.load %arg1[%c0_6, %c0_7] : memref<368x32xf32, #tpu.memory_space<vmem>>, vector<16x32xf32>
    %cst = arith.constant dense<0.000000e+00> : vector<64x32xf32>
    %17 = tpu.matmul %15, %16, %cst {dimension_numbers = #tpu.dot_dimension_numbers<[1], [0], [0], [1], [0, 0, 1, 1], [], []>} : vector<64x16xf32>, vector<16x32xf32>, vector<64x32xf32> -> vector<64x32xf32>
    %c0_8 = arith.constant 0 : index
    %c0_9 = arith.constant 0 : index
    %18 = vector.load %arg2[%c0_8, %c0_9] : memref<9x32xf32, #tpu.memory_space<vmem>>, vector<1x32xf32>
    %19 = vector.broadcast %18 : vector<1x32xf32> to vector<64x32xf32>
    %20 = arith.addf %17, %19 : vector<64x32xf32>
    %c16 = arith.constant 16 : index
    %c0_10 = arith.constant 0 : index
    %21 = vector.load %arg1[%c16, %c0_10] : memref<368x32xf32, #tpu.memory_space<vmem>>, vector<16x32xf32>
    %cst_11 = arith.constant dense<0.000000e+00> : vector<64x32xf32>
    %22 = tpu.matmul %15, %21, %cst_11 {dimension_numbers = #tpu.dot_dimension_numbers<[1], [0], [0], [1], [0, 0, 1, 1], [], []>} : vector<64x16xf32>, vector<16x32xf32>, vector<64x32xf32> -> vector<64x32xf32>
    %c1 = arith.constant 1 : index
    %c0_12 = arith.constant 0 : index
    %23 = vector.load %arg2[%c1, %c0_12] : memref<9x32xf32, #tpu.memory_space<vmem>>, vector<1x32xf32>
    %24 = vector.broadcast %23 : vector<1x32xf32> to vector<64x32xf32>
    %25 = arith.addf %22, %24 : vector<64x32xf32>
    %c32 = arith.constant 32 : index
    %c0_13 = arith.constant 0 : index
    %26 = vector.load %arg1[%c32, %c0_13] : memref<368x32xf32, #tpu.memory_space<vmem>>, vector<16x32xf32>
    %cst_14 = arith.constant dense<0.000000e+00> : vector<64x32xf32>
    %27 = tpu.matmul %15, %26, %cst_14 {dimension_numbers = #tpu.dot_dimension_numbers<[1], [0], [0], [1], [0, 0, 1, 1], [], []>} : vector<64x16xf32>, vector<16x32xf32>, vector<64x32xf32> -> vector<64x32xf32>
    %c2 = arith.constant 2 : index
    %c0_15 = arith.constant 0 : index
    %28 = vector.load %arg2[%c2, %c0_15] : memref<9x32xf32, #tpu.memory_space<vmem>>, vector<1x32xf32>
    %29 = vector.broadcast %28 : vector<1x32xf32> to vector<64x32xf32>
    %30 = arith.addf %27, %29 : vector<64x32xf32>
    %cst_16 = arith.constant 0.000000e+00 : f32
    %31 = vector.broadcast %cst_16 : f32 to vector<8x32xf32>
    %cst_17 = arith.constant 0.000000e+00 : f32
    %32 = vector.broadcast %cst_17 : f32 to vector<8x32xf32>
    %c240 = arith.constant 240 : index
    %c0_18 = arith.constant 0 : index
    %33 = vector.load %arg1[%c240, %c0_18] : memref<368x32xf32, #tpu.memory_space<vmem>>, vector<32x32xf32>
    %cst_19 = arith.constant dense<0.000000e+00> : vector<8x32xf32>
    %34 = tpu.matmul %32, %33, %cst_19 {dimension_numbers = #tpu.dot_dimension_numbers<[1], [0], [0], [1], [0, 0, 1, 1], [], []>} : vector<8x32xf32>, vector<32x32xf32>, vector<8x32xf32> -> vector<8x32xf32>
    %c272 = arith.constant 272 : index
    %c0_20 = arith.constant 0 : index
    %35 = vector.load %arg1[%c272, %c0_20] : memref<368x32xf32, #tpu.memory_space<vmem>>, vector<32x32xf32>
    %cst_21 = arith.constant dense<0.000000e+00> : vector<8x32xf32>
    %36 = tpu.matmul %32, %35, %cst_21 {dimension_numbers = #tpu.dot_dimension_numbers<[1], [0], [0], [1], [0, 0, 1, 1], [], []>} : vector<8x32xf32>, vector<32x32xf32>, vector<8x32xf32> -> vector<8x32xf32>
    %c304 = arith.constant 304 : index
    %c0_22 = arith.constant 0 : index
    %37 = vector.load %arg1[%c304, %c0_22] : memref<368x32xf32, #tpu.memory_space<vmem>>, vector<32x32xf32>
    %cst_23 = arith.constant dense<0.000000e+00> : vector<8x32xf32>
    %38 = tpu.matmul %32, %37, %cst_23 {dimension_numbers = #tpu.dot_dimension_numbers<[1], [0], [0], [1], [0, 0, 1, 1], [], []>} : vector<8x32xf32>, vector<32x32xf32>, vector<8x32xf32> -> vector<8x32xf32>
    %c48 = arith.constant 48 : index
    %c0_24 = arith.constant 0 : index
    %39 = vector.load %arg1[%c48, %c0_24] : memref<368x32xf32, #tpu.memory_space<vmem>>, vector<32x32xf32>
    %cst_25 = arith.constant dense<0.000000e+00> : vector<8x32xf32>
    %40 = tpu.matmul %31, %39, %cst_25 {dimension_numbers = #tpu.dot_dimension_numbers<[1], [0], [0], [1], [0, 0, 1, 1], [], []>} : vector<8x32xf32>, vector<32x32xf32>, vector<8x32xf32> -> vector<8x32xf32>
    %c80 = arith.constant 80 : index
    %c0_26 = arith.constant 0 : index
    %41 = vector.load %arg1[%c80, %c0_26] : memref<368x32xf32, #tpu.memory_space<vmem>>, vector<32x32xf32>
    %cst_27 = arith.constant dense<0.000000e+00> : vector<8x32xf32>
    %42 = tpu.matmul %31, %41, %cst_27 {dimension_numbers = #tpu.dot_dimension_numbers<[1], [0], [0], [1], [0, 0, 1, 1], [], []>} : vector<8x32xf32>, vector<32x32xf32>, vector<8x32xf32> -> vector<8x32xf32>
    %c112 = arith.constant 112 : index
    %c0_28 = arith.constant 0 : index
    %43 = vector.load %arg1[%c112, %c0_28] : memref<368x32xf32, #tpu.memory_space<vmem>>, vector<32x32xf32>
    %cst_29 = arith.constant dense<0.000000e+00> : vector<8x32xf32>
    %44 = tpu.matmul %31, %43, %cst_29 {dimension_numbers = #tpu.dot_dimension_numbers<[1], [0], [0], [1], [0, 0, 1, 1], [], []>} : vector<8x32xf32>, vector<32x32xf32>, vector<8x32xf32> -> vector<8x32xf32>
    %45 = vector.extract_strided_slice %20 {offsets = [0, 0], sizes = [8, 32], strides = [1, 1]} : vector<64x32xf32> to vector<8x32xf32>
    %46 = arith.addf %45, %40 : vector<8x32xf32>
    %47 = arith.negf %46 : vector<8x32xf32>
    %48 = math.exp %47 : vector<8x32xf32>
    %cst_30 = arith.constant 1.000000e+00 : f32
    %49 = vector.broadcast %cst_30 : f32 to vector<8x32xf32>
    %50 = arith.addf %49, %48 : vector<8x32xf32>
    %51 = arith.divf %49, %50 : vector<8x32xf32>
    %52 = vector.extract_strided_slice %25 {offsets = [0, 0], sizes = [8, 32], strides = [1, 1]} : vector<64x32xf32> to vector<8x32xf32>
    %53 = arith.addf %52, %42 : vector<8x32xf32>
    %54 = arith.negf %53 : vector<8x32xf32>
    %55 = math.exp %54 : vector<8x32xf32>
    %cst_31 = arith.constant 1.000000e+00 : f32
    %56 = vector.broadcast %cst_31 : f32 to vector<8x32xf32>
    %57 = arith.addf %56, %55 : vector<8x32xf32>
    %58 = arith.divf %56, %57 : vector<8x32xf32>
    %59 = vector.extract_strided_slice %30 {offsets = [0, 0], sizes = [8, 32], strides = [1, 1]} : vector<64x32xf32> to vector<8x32xf32>
    %60 = arith.addf %44, %2 : vector<8x32xf32>
    %61 = arith.mulf %51, %60 : vector<8x32xf32>
    %62 = arith.addf %59, %61 : vector<8x32xf32>
    %63 = math.tanh %62 : vector<8x32xf32>
    %64 = arith.subf %31, %63 : vector<8x32xf32>
    %65 = arith.mulf %58, %64 : vector<8x32xf32>
    %66 = arith.addf %63, %65 : vector<8x32xf32>
    %c144 = arith.constant 144 : index
    %c0_32 = arith.constant 0 : index
    %67 = vector.load %arg1[%c144, %c0_32] : memref<368x32xf32, #tpu.memory_space<vmem>>, vector<32x32xf32>
    %cst_33 = arith.constant dense<0.000000e+00> : vector<8x32xf32>
    %68 = tpu.matmul %66, %67, %cst_33 {dimension_numbers = #tpu.dot_dimension_numbers<[1], [0], [0], [1], [0, 0, 1, 1], [], []>} : vector<8x32xf32>, vector<32x32xf32>, vector<8x32xf32> -> vector<8x32xf32>
    %69 = arith.addf %68, %5 : vector<8x32xf32>
    %c176 = arith.constant 176 : index
    %c0_34 = arith.constant 0 : index
    %70 = vector.load %arg1[%c176, %c0_34] : memref<368x32xf32, #tpu.memory_space<vmem>>, vector<32x32xf32>
    %cst_35 = arith.constant dense<0.000000e+00> : vector<8x32xf32>
    %71 = tpu.matmul %66, %70, %cst_35 {dimension_numbers = #tpu.dot_dimension_numbers<[1], [0], [0], [1], [0, 0, 1, 1], [], []>} : vector<8x32xf32>, vector<32x32xf32>, vector<8x32xf32> -> vector<8x32xf32>
    %72 = arith.addf %71, %8 : vector<8x32xf32>
    %c208 = arith.constant 208 : index
    %c0_36 = arith.constant 0 : index
    %73 = vector.load %arg1[%c208, %c0_36] : memref<368x32xf32, #tpu.memory_space<vmem>>, vector<32x32xf32>
    %cst_37 = arith.constant dense<0.000000e+00> : vector<8x32xf32>
    %74 = tpu.matmul %66, %73, %cst_37 {dimension_numbers = #tpu.dot_dimension_numbers<[1], [0], [0], [1], [0, 0, 1, 1], [], []>} : vector<8x32xf32>, vector<32x32xf32>, vector<8x32xf32> -> vector<8x32xf32>
    %75 = arith.addf %74, %11 : vector<8x32xf32>
    %76 = arith.addf %69, %34 : vector<8x32xf32>
    %77 = arith.negf %76 : vector<8x32xf32>
    %78 = math.exp %77 : vector<8x32xf32>
    %cst_38 = arith.constant 1.000000e+00 : f32
    %79 = vector.broadcast %cst_38 : f32 to vector<8x32xf32>
    %80 = arith.addf %79, %78 : vector<8x32xf32>
    %81 = arith.divf %79, %80 : vector<8x32xf32>
    %82 = arith.addf %72, %36 : vector<8x32xf32>
    %83 = arith.negf %82 : vector<8x32xf32>
    %84 = math.exp %83 : vector<8x32xf32>
    %cst_39 = arith.constant 1.000000e+00 : f32
    %85 = vector.broadcast %cst_39 : f32 to vector<8x32xf32>
    %86 = arith.addf %85, %84 : vector<8x32xf32>
    %87 = arith.divf %85, %86 : vector<8x32xf32>
    %88 = arith.addf %38, %14 : vector<8x32xf32>
    %89 = arith.mulf %81, %88 : vector<8x32xf32>
    %90 = arith.addf %75, %89 : vector<8x32xf32>
    %91 = math.tanh %90 : vector<8x32xf32>
    %92 = arith.subf %32, %91 : vector<8x32xf32>
    %93 = arith.mulf %87, %92 : vector<8x32xf32>
    %94 = arith.addf %91, %93 : vector<8x32xf32>
    %c240_40 = arith.constant 240 : index
    %c0_41 = arith.constant 0 : index
    %95 = vector.load %arg1[%c240_40, %c0_41] : memref<368x32xf32, #tpu.memory_space<vmem>>, vector<32x32xf32>
    %cst_42 = arith.constant dense<0.000000e+00> : vector<8x32xf32>
    %96 = tpu.matmul %94, %95, %cst_42 {dimension_numbers = #tpu.dot_dimension_numbers<[1], [0], [0], [1], [0, 0, 1, 1], [], []>} : vector<8x32xf32>, vector<32x32xf32>, vector<8x32xf32> -> vector<8x32xf32>
    %c272_43 = arith.constant 272 : index
    %c0_44 = arith.constant 0 : index
    %97 = vector.load %arg1[%c272_43, %c0_44] : memref<368x32xf32, #tpu.memory_space<vmem>>, vector<32x32xf32>
    %cst_45 = arith.constant dense<0.000000e+00> : vector<8x32xf32>
    %98 = tpu.matmul %94, %97, %cst_45 {dimension_numbers = #tpu.dot_dimension_numbers<[1], [0], [0], [1], [0, 0, 1, 1], [], []>} : vector<8x32xf32>, vector<32x32xf32>, vector<8x32xf32> -> vector<8x32xf32>
    %c304_46 = arith.constant 304 : index
    %c0_47 = arith.constant 0 : index
    %99 = vector.load %arg1[%c304_46, %c0_47] : memref<368x32xf32, #tpu.memory_space<vmem>>, vector<32x32xf32>
    %cst_48 = arith.constant dense<0.000000e+00> : vector<8x32xf32>
    %100 = tpu.matmul %94, %99, %cst_48 {dimension_numbers = #tpu.dot_dimension_numbers<[1], [0], [0], [1], [0, 0, 1, 1], [], []>} : vector<8x32xf32>, vector<32x32xf32>, vector<8x32xf32> -> vector<8x32xf32>
    %c48_49 = arith.constant 48 : index
    %c0_50 = arith.constant 0 : index
    %101 = vector.load %arg1[%c48_49, %c0_50] : memref<368x32xf32, #tpu.memory_space<vmem>>, vector<32x32xf32>
    %cst_51 = arith.constant dense<0.000000e+00> : vector<8x32xf32>
    %102 = tpu.matmul %66, %101, %cst_51 {dimension_numbers = #tpu.dot_dimension_numbers<[1], [0], [0], [1], [0, 0, 1, 1], [], []>} : vector<8x32xf32>, vector<32x32xf32>, vector<8x32xf32> -> vector<8x32xf32>
    %c80_52 = arith.constant 80 : index
    %c0_53 = arith.constant 0 : index
    %103 = vector.load %arg1[%c80_52, %c0_53] : memref<368x32xf32, #tpu.memory_space<vmem>>, vector<32x32xf32>
    %cst_54 = arith.constant dense<0.000000e+00> : vector<8x32xf32>
    %104 = tpu.matmul %66, %103, %cst_54 {dimension_numbers = #tpu.dot_dimension_numbers<[1], [0], [0], [1], [0, 0, 1, 1], [], []>} : vector<8x32xf32>, vector<32x32xf32>, vector<8x32xf32> -> vector<8x32xf32>
    %c112_55 = arith.constant 112 : index
    %c0_56 = arith.constant 0 : index
    %105 = vector.load %arg1[%c112_55, %c0_56] : memref<368x32xf32, #tpu.memory_space<vmem>>, vector<32x32xf32>
    %cst_57 = arith.constant dense<0.000000e+00> : vector<8x32xf32>
    %106 = tpu.matmul %66, %105, %cst_57 {dimension_numbers = #tpu.dot_dimension_numbers<[1], [0], [0], [1], [0, 0, 1, 1], [], []>} : vector<8x32xf32>, vector<32x32xf32>, vector<8x32xf32> -> vector<8x32xf32>
    %107 = vector.extract_strided_slice %20 {offsets = [8, 0], sizes = [8, 32], strides = [1, 1]} : vector<64x32xf32> to vector<8x32xf32>
    %108 = arith.addf %107, %102 : vector<8x32xf32>
    %109 = arith.negf %108 : vector<8x32xf32>
    %110 = math.exp %109 : vector<8x32xf32>
    %cst_58 = arith.constant 1.000000e+00 : f32
    %111 = vector.broadcast %cst_58 : f32 to vector<8x32xf32>
    %112 = arith.addf %111, %110 : vector<8x32xf32>
    %113 = arith.divf %111, %112 : vector<8x32xf32>
    %114 = vector.extract_strided_slice %25 {offsets = [8, 0], sizes = [8, 32], strides = [1, 1]} : vector<64x32xf32> to vector<8x32xf32>
    %115 = arith.addf %114, %104 : vector<8x32xf32>
    %116 = arith.negf %115 : vector<8x32xf32>
    %117 = math.exp %116 : vector<8x32xf32>
    %cst_59 = arith.constant 1.000000e+00 : f32
    %118 = vector.broadcast %cst_59 : f32 to vector<8x32xf32>
    %119 = arith.addf %118, %117 : vector<8x32xf32>
    %120 = arith.divf %118, %119 : vector<8x32xf32>
    %121 = vector.extract_strided_slice %30 {offsets = [8, 0], sizes = [8, 32], strides = [1, 1]} : vector<64x32xf32> to vector<8x32xf32>
    %122 = arith.addf %106, %2 : vector<8x32xf32>
    %123 = arith.mulf %113, %122 : vector<8x32xf32>
    %124 = arith.addf %121, %123 : vector<8x32xf32>
    %125 = math.tanh %124 : vector<8x32xf32>
    %126 = arith.subf %66, %125 : vector<8x32xf32>
    %127 = arith.mulf %120, %126 : vector<8x32xf32>
    %128 = arith.addf %125, %127 : vector<8x32xf32>
    %c144_60 = arith.constant 144 : index
    %c0_61 = arith.constant 0 : index
    %129 = vector.load %arg1[%c144_60, %c0_61] : memref<368x32xf32, #tpu.memory_space<vmem>>, vector<32x32xf32>
    %cst_62 = arith.constant dense<0.000000e+00> : vector<8x32xf32>
    %130 = tpu.matmul %128, %129, %cst_62 {dimension_numbers = #tpu.dot_dimension_numbers<[1], [0], [0], [1], [0, 0, 1, 1], [], []>} : vector<8x32xf32>, vector<32x32xf32>, vector<8x32xf32> -> vector<8x32xf32>
    %131 = arith.addf %130, %5 : vector<8x32xf32>
    %c176_63 = arith.constant 176 : index
    %c0_64 = arith.constant 0 : index
    %132 = vector.load %arg1[%c176_63, %c0_64] : memref<368x32xf32, #tpu.memory_space<vmem>>, vector<32x32xf32>
    %cst_65 = arith.constant dense<0.000000e+00> : vector<8x32xf32>
    %133 = tpu.matmul %128, %132, %cst_65 {dimension_numbers = #tpu.dot_dimension_numbers<[1], [0], [0], [1], [0, 0, 1, 1], [], []>} : vector<8x32xf32>, vector<32x32xf32>, vector<8x32xf32> -> vector<8x32xf32>
    %134 = arith.addf %133, %8 : vector<8x32xf32>
    %c208_66 = arith.constant 208 : index
    %c0_67 = arith.constant 0 : index
    %135 = vector.load %arg1[%c208_66, %c0_67] : memref<368x32xf32, #tpu.memory_space<vmem>>, vector<32x32xf32>
    %cst_68 = arith.constant dense<0.000000e+00> : vector<8x32xf32>
    %136 = tpu.matmul %128, %135, %cst_68 {dimension_numbers = #tpu.dot_dimension_numbers<[1], [0], [0], [1], [0, 0, 1, 1], [], []>} : vector<8x32xf32>, vector<32x32xf32>, vector<8x32xf32> -> vector<8x32xf32>
    %137 = arith.addf %136, %11 : vector<8x32xf32>
    %138 = arith.addf %131, %96 : vector<8x32xf32>
    %139 = arith.negf %138 : vector<8x32xf32>
    %140 = math.exp %139 : vector<8x32xf32>
    %cst_69 = arith.constant 1.000000e+00 : f32
    %141 = vector.broadcast %cst_69 : f32 to vector<8x32xf32>
    %142 = arith.addf %141, %140 : vector<8x32xf32>
    %143 = arith.divf %141, %142 : vector<8x32xf32>
    %144 = arith.addf %134, %98 : vector<8x32xf32>
    %145 = arith.negf %144 : vector<8x32xf32>
    %146 = math.exp %145 : vector<8x32xf32>
    %cst_70 = arith.constant 1.000000e+00 : f32
    %147 = vector.broadcast %cst_70 : f32 to vector<8x32xf32>
    %148 = arith.addf %147, %146 : vector<8x32xf32>
    %149 = arith.divf %147, %148 : vector<8x32xf32>
    %150 = arith.addf %100, %14 : vector<8x32xf32>
    %151 = arith.mulf %143, %150 : vector<8x32xf32>
    %152 = arith.addf %137, %151 : vector<8x32xf32>
    %153 = math.tanh %152 : vector<8x32xf32>
    %154 = arith.subf %94, %153 : vector<8x32xf32>
    %155 = arith.mulf %149, %154 : vector<8x32xf32>
    %156 = arith.addf %153, %155 : vector<8x32xf32>
    %c240_71 = arith.constant 240 : index
    %c0_72 = arith.constant 0 : index
    %157 = vector.load %arg1[%c240_71, %c0_72] : memref<368x32xf32, #tpu.memory_space<vmem>>, vector<32x32xf32>
    %cst_73 = arith.constant dense<0.000000e+00> : vector<8x32xf32>
    %158 = tpu.matmul %156, %157, %cst_73 {dimension_numbers = #tpu.dot_dimension_numbers<[1], [0], [0], [1], [0, 0, 1, 1], [], []>} : vector<8x32xf32>, vector<32x32xf32>, vector<8x32xf32> -> vector<8x32xf32>
    %c272_74 = arith.constant 272 : index
    %c0_75 = arith.constant 0 : index
    %159 = vector.load %arg1[%c272_74, %c0_75] : memref<368x32xf32, #tpu.memory_space<vmem>>, vector<32x32xf32>
    %cst_76 = arith.constant dense<0.000000e+00> : vector<8x32xf32>
    %160 = tpu.matmul %156, %159, %cst_76 {dimension_numbers = #tpu.dot_dimension_numbers<[1], [0], [0], [1], [0, 0, 1, 1], [], []>} : vector<8x32xf32>, vector<32x32xf32>, vector<8x32xf32> -> vector<8x32xf32>
    %c304_77 = arith.constant 304 : index
    %c0_78 = arith.constant 0 : index
    %161 = vector.load %arg1[%c304_77, %c0_78] : memref<368x32xf32, #tpu.memory_space<vmem>>, vector<32x32xf32>
    %cst_79 = arith.constant dense<0.000000e+00> : vector<8x32xf32>
    %162 = tpu.matmul %156, %161, %cst_79 {dimension_numbers = #tpu.dot_dimension_numbers<[1], [0], [0], [1], [0, 0, 1, 1], [], []>} : vector<8x32xf32>, vector<32x32xf32>, vector<8x32xf32> -> vector<8x32xf32>
    %c48_80 = arith.constant 48 : index
    %c0_81 = arith.constant 0 : index
    %163 = vector.load %arg1[%c48_80, %c0_81] : memref<368x32xf32, #tpu.memory_space<vmem>>, vector<32x32xf32>
    %cst_82 = arith.constant dense<0.000000e+00> : vector<8x32xf32>
    %164 = tpu.matmul %128, %163, %cst_82 {dimension_numbers = #tpu.dot_dimension_numbers<[1], [0], [0], [1], [0, 0, 1, 1], [], []>} : vector<8x32xf32>, vector<32x32xf32>, vector<8x32xf32> -> vector<8x32xf32>
    %c80_83 = arith.constant 80 : index
    %c0_84 = arith.constant 0 : index
    %165 = vector.load %arg1[%c80_83, %c0_84] : memref<368x32xf32, #tpu.memory_space<vmem>>, vector<32x32xf32>
    %cst_85 = arith.constant dense<0.000000e+00> : vector<8x32xf32>
    %166 = tpu.matmul %128, %165, %cst_85 {dimension_numbers = #tpu.dot_dimension_numbers<[1], [0], [0], [1], [0, 0, 1, 1], [], []>} : vector<8x32xf32>, vector<32x32xf32>, vector<8x32xf32> -> vector<8x32xf32>
    %c112_86 = arith.constant 112 : index
    %c0_87 = arith.constant 0 : index
    %167 = vector.load %arg1[%c112_86, %c0_87] : memref<368x32xf32, #tpu.memory_space<vmem>>, vector<32x32xf32>
    %cst_88 = arith.constant dense<0.000000e+00> : vector<8x32xf32>
    %168 = tpu.matmul %128, %167, %cst_88 {dimension_numbers = #tpu.dot_dimension_numbers<[1], [0], [0], [1], [0, 0, 1, 1], [], []>} : vector<8x32xf32>, vector<32x32xf32>, vector<8x32xf32> -> vector<8x32xf32>
    %169 = vector.extract_strided_slice %20 {offsets = [16, 0], sizes = [8, 32], strides = [1, 1]} : vector<64x32xf32> to vector<8x32xf32>
    %170 = arith.addf %169, %164 : vector<8x32xf32>
    %171 = arith.negf %170 : vector<8x32xf32>
    %172 = math.exp %171 : vector<8x32xf32>
    %cst_89 = arith.constant 1.000000e+00 : f32
    %173 = vector.broadcast %cst_89 : f32 to vector<8x32xf32>
    %174 = arith.addf %173, %172 : vector<8x32xf32>
    %175 = arith.divf %173, %174 : vector<8x32xf32>
    %176 = vector.extract_strided_slice %25 {offsets = [16, 0], sizes = [8, 32], strides = [1, 1]} : vector<64x32xf32> to vector<8x32xf32>
    %177 = arith.addf %176, %166 : vector<8x32xf32>
    %178 = arith.negf %177 : vector<8x32xf32>
    %179 = math.exp %178 : vector<8x32xf32>
    %cst_90 = arith.constant 1.000000e+00 : f32
    %180 = vector.broadcast %cst_90 : f32 to vector<8x32xf32>
    %181 = arith.addf %180, %179 : vector<8x32xf32>
    %182 = arith.divf %180, %181 : vector<8x32xf32>
    %183 = vector.extract_strided_slice %30 {offsets = [16, 0], sizes = [8, 32], strides = [1, 1]} : vector<64x32xf32> to vector<8x32xf32>
    %184 = arith.addf %168, %2 : vector<8x32xf32>
    %185 = arith.mulf %175, %184 : vector<8x32xf32>
    %186 = arith.addf %183, %185 : vector<8x32xf32>
    %187 = math.tanh %186 : vector<8x32xf32>
    %188 = arith.subf %128, %187 : vector<8x32xf32>
    %189 = arith.mulf %182, %188 : vector<8x32xf32>
    %190 = arith.addf %187, %189 : vector<8x32xf32>
    %c144_91 = arith.constant 144 : index
    %c0_92 = arith.constant 0 : index
    %191 = vector.load %arg1[%c144_91, %c0_92] : memref<368x32xf32, #tpu.memory_space<vmem>>, vector<32x32xf32>
    %cst_93 = arith.constant dense<0.000000e+00> : vector<8x32xf32>
    %192 = tpu.matmul %190, %191, %cst_93 {dimension_numbers = #tpu.dot_dimension_numbers<[1], [0], [0], [1], [0, 0, 1, 1], [], []>} : vector<8x32xf32>, vector<32x32xf32>, vector<8x32xf32> -> vector<8x32xf32>
    %193 = arith.addf %192, %5 : vector<8x32xf32>
    %c176_94 = arith.constant 176 : index
    %c0_95 = arith.constant 0 : index
    %194 = vector.load %arg1[%c176_94, %c0_95] : memref<368x32xf32, #tpu.memory_space<vmem>>, vector<32x32xf32>
    %cst_96 = arith.constant dense<0.000000e+00> : vector<8x32xf32>
    %195 = tpu.matmul %190, %194, %cst_96 {dimension_numbers = #tpu.dot_dimension_numbers<[1], [0], [0], [1], [0, 0, 1, 1], [], []>} : vector<8x32xf32>, vector<32x32xf32>, vector<8x32xf32> -> vector<8x32xf32>
    %196 = arith.addf %195, %8 : vector<8x32xf32>
    %c208_97 = arith.constant 208 : index
    %c0_98 = arith.constant 0 : index
    %197 = vector.load %arg1[%c208_97, %c0_98] : memref<368x32xf32, #tpu.memory_space<vmem>>, vector<32x32xf32>
    %cst_99 = arith.constant dense<0.000000e+00> : vector<8x32xf32>
    %198 = tpu.matmul %190, %197, %cst_99 {dimension_numbers = #tpu.dot_dimension_numbers<[1], [0], [0], [1], [0, 0, 1, 1], [], []>} : vector<8x32xf32>, vector<32x32xf32>, vector<8x32xf32> -> vector<8x32xf32>
    %199 = arith.addf %198, %11 : vector<8x32xf32>
    %200 = arith.addf %193, %158 : vector<8x32xf32>
    %201 = arith.negf %200 : vector<8x32xf32>
    %202 = math.exp %201 : vector<8x32xf32>
    %cst_100 = arith.constant 1.000000e+00 : f32
    %203 = vector.broadcast %cst_100 : f32 to vector<8x32xf32>
    %204 = arith.addf %203, %202 : vector<8x32xf32>
    %205 = arith.divf %203, %204 : vector<8x32xf32>
    %206 = arith.addf %196, %160 : vector<8x32xf32>
    %207 = arith.negf %206 : vector<8x32xf32>
    %208 = math.exp %207 : vector<8x32xf32>
    %cst_101 = arith.constant 1.000000e+00 : f32
    %209 = vector.broadcast %cst_101 : f32 to vector<8x32xf32>
    %210 = arith.addf %209, %208 : vector<8x32xf32>
    %211 = arith.divf %209, %210 : vector<8x32xf32>
    %212 = arith.addf %162, %14 : vector<8x32xf32>
    %213 = arith.mulf %205, %212 : vector<8x32xf32>
    %214 = arith.addf %199, %213 : vector<8x32xf32>
    %215 = math.tanh %214 : vector<8x32xf32>
    %216 = arith.subf %156, %215 : vector<8x32xf32>
    %217 = arith.mulf %211, %216 : vector<8x32xf32>
    %218 = arith.addf %215, %217 : vector<8x32xf32>
    %c240_102 = arith.constant 240 : index
    %c0_103 = arith.constant 0 : index
    %219 = vector.load %arg1[%c240_102, %c0_103] : memref<368x32xf32, #tpu.memory_space<vmem>>, vector<32x32xf32>
    %cst_104 = arith.constant dense<0.000000e+00> : vector<8x32xf32>
    %220 = tpu.matmul %218, %219, %cst_104 {dimension_numbers = #tpu.dot_dimension_numbers<[1], [0], [0], [1], [0, 0, 1, 1], [], []>} : vector<8x32xf32>, vector<32x32xf32>, vector<8x32xf32> -> vector<8x32xf32>
    %c272_105 = arith.constant 272 : index
    %c0_106 = arith.constant 0 : index
    %221 = vector.load %arg1[%c272_105, %c0_106] : memref<368x32xf32, #tpu.memory_space<vmem>>, vector<32x32xf32>
    %cst_107 = arith.constant dense<0.000000e+00> : vector<8x32xf32>
    %222 = tpu.matmul %218, %221, %cst_107 {dimension_numbers = #tpu.dot_dimension_numbers<[1], [0], [0], [1], [0, 0, 1, 1], [], []>} : vector<8x32xf32>, vector<32x32xf32>, vector<8x32xf32> -> vector<8x32xf32>
    %c304_108 = arith.constant 304 : index
    %c0_109 = arith.constant 0 : index
    %223 = vector.load %arg1[%c304_108, %c0_109] : memref<368x32xf32, #tpu.memory_space<vmem>>, vector<32x32xf32>
    %cst_110 = arith.constant dense<0.000000e+00> : vector<8x32xf32>
    %224 = tpu.matmul %218, %223, %cst_110 {dimension_numbers = #tpu.dot_dimension_numbers<[1], [0], [0], [1], [0, 0, 1, 1], [], []>} : vector<8x32xf32>, vector<32x32xf32>, vector<8x32xf32> -> vector<8x32xf32>
    %c48_111 = arith.constant 48 : index
    %c0_112 = arith.constant 0 : index
    %225 = vector.load %arg1[%c48_111, %c0_112] : memref<368x32xf32, #tpu.memory_space<vmem>>, vector<32x32xf32>
    %cst_113 = arith.constant dense<0.000000e+00> : vector<8x32xf32>
    %226 = tpu.matmul %190, %225, %cst_113 {dimension_numbers = #tpu.dot_dimension_numbers<[1], [0], [0], [1], [0, 0, 1, 1], [], []>} : vector<8x32xf32>, vector<32x32xf32>, vector<8x32xf32> -> vector<8x32xf32>
    %c80_114 = arith.constant 80 : index
    %c0_115 = arith.constant 0 : index
    %227 = vector.load %arg1[%c80_114, %c0_115] : memref<368x32xf32, #tpu.memory_space<vmem>>, vector<32x32xf32>
    %cst_116 = arith.constant dense<0.000000e+00> : vector<8x32xf32>
    %228 = tpu.matmul %190, %227, %cst_116 {dimension_numbers = #tpu.dot_dimension_numbers<[1], [0], [0], [1], [0, 0, 1, 1], [], []>} : vector<8x32xf32>, vector<32x32xf32>, vector<8x32xf32> -> vector<8x32xf32>
    %c112_117 = arith.constant 112 : index
    %c0_118 = arith.constant 0 : index
    %229 = vector.load %arg1[%c112_117, %c0_118] : memref<368x32xf32, #tpu.memory_space<vmem>>, vector<32x32xf32>
    %cst_119 = arith.constant dense<0.000000e+00> : vector<8x32xf32>
    %230 = tpu.matmul %190, %229, %cst_119 {dimension_numbers = #tpu.dot_dimension_numbers<[1], [0], [0], [1], [0, 0, 1, 1], [], []>} : vector<8x32xf32>, vector<32x32xf32>, vector<8x32xf32> -> vector<8x32xf32>
    %231 = vector.extract_strided_slice %20 {offsets = [24, 0], sizes = [8, 32], strides = [1, 1]} : vector<64x32xf32> to vector<8x32xf32>
    %232 = arith.addf %231, %226 : vector<8x32xf32>
    %233 = arith.negf %232 : vector<8x32xf32>
    %234 = math.exp %233 : vector<8x32xf32>
    %cst_120 = arith.constant 1.000000e+00 : f32
    %235 = vector.broadcast %cst_120 : f32 to vector<8x32xf32>
    %236 = arith.addf %235, %234 : vector<8x32xf32>
    %237 = arith.divf %235, %236 : vector<8x32xf32>
    %238 = vector.extract_strided_slice %25 {offsets = [24, 0], sizes = [8, 32], strides = [1, 1]} : vector<64x32xf32> to vector<8x32xf32>
    %239 = arith.addf %238, %228 : vector<8x32xf32>
    %240 = arith.negf %239 : vector<8x32xf32>
    %241 = math.exp %240 : vector<8x32xf32>
    %cst_121 = arith.constant 1.000000e+00 : f32
    %242 = vector.broadcast %cst_121 : f32 to vector<8x32xf32>
    %243 = arith.addf %242, %241 : vector<8x32xf32>
    %244 = arith.divf %242, %243 : vector<8x32xf32>
    %245 = vector.extract_strided_slice %30 {offsets = [24, 0], sizes = [8, 32], strides = [1, 1]} : vector<64x32xf32> to vector<8x32xf32>
    %246 = arith.addf %230, %2 : vector<8x32xf32>
    %247 = arith.mulf %237, %246 : vector<8x32xf32>
    %248 = arith.addf %245, %247 : vector<8x32xf32>
    %249 = math.tanh %248 : vector<8x32xf32>
    %250 = arith.subf %190, %249 : vector<8x32xf32>
    %251 = arith.mulf %244, %250 : vector<8x32xf32>
    %252 = arith.addf %249, %251 : vector<8x32xf32>
    %c144_122 = arith.constant 144 : index
    %c0_123 = arith.constant 0 : index
    %253 = vector.load %arg1[%c144_122, %c0_123] : memref<368x32xf32, #tpu.memory_space<vmem>>, vector<32x32xf32>
    %cst_124 = arith.constant dense<0.000000e+00> : vector<8x32xf32>
    %254 = tpu.matmul %252, %253, %cst_124 {dimension_numbers = #tpu.dot_dimension_numbers<[1], [0], [0], [1], [0, 0, 1, 1], [], []>} : vector<8x32xf32>, vector<32x32xf32>, vector<8x32xf32> -> vector<8x32xf32>
    %255 = arith.addf %254, %5 : vector<8x32xf32>
    %c176_125 = arith.constant 176 : index
    %c0_126 = arith.constant 0 : index
    %256 = vector.load %arg1[%c176_125, %c0_126] : memref<368x32xf32, #tpu.memory_space<vmem>>, vector<32x32xf32>
    %cst_127 = arith.constant dense<0.000000e+00> : vector<8x32xf32>
    %257 = tpu.matmul %252, %256, %cst_127 {dimension_numbers = #tpu.dot_dimension_numbers<[1], [0], [0], [1], [0, 0, 1, 1], [], []>} : vector<8x32xf32>, vector<32x32xf32>, vector<8x32xf32> -> vector<8x32xf32>
    %258 = arith.addf %257, %8 : vector<8x32xf32>
    %c208_128 = arith.constant 208 : index
    %c0_129 = arith.constant 0 : index
    %259 = vector.load %arg1[%c208_128, %c0_129] : memref<368x32xf32, #tpu.memory_space<vmem>>, vector<32x32xf32>
    %cst_130 = arith.constant dense<0.000000e+00> : vector<8x32xf32>
    %260 = tpu.matmul %252, %259, %cst_130 {dimension_numbers = #tpu.dot_dimension_numbers<[1], [0], [0], [1], [0, 0, 1, 1], [], []>} : vector<8x32xf32>, vector<32x32xf32>, vector<8x32xf32> -> vector<8x32xf32>
    %261 = arith.addf %260, %11 : vector<8x32xf32>
    %262 = arith.addf %255, %220 : vector<8x32xf32>
    %263 = arith.negf %262 : vector<8x32xf32>
    %264 = math.exp %263 : vector<8x32xf32>
    %cst_131 = arith.constant 1.000000e+00 : f32
    %265 = vector.broadcast %cst_131 : f32 to vector<8x32xf32>
    %266 = arith.addf %265, %264 : vector<8x32xf32>
    %267 = arith.divf %265, %266 : vector<8x32xf32>
    %268 = arith.addf %258, %222 : vector<8x32xf32>
    %269 = arith.negf %268 : vector<8x32xf32>
    %270 = math.exp %269 : vector<8x32xf32>
    %cst_132 = arith.constant 1.000000e+00 : f32
    %271 = vector.broadcast %cst_132 : f32 to vector<8x32xf32>
    %272 = arith.addf %271, %270 : vector<8x32xf32>
    %273 = arith.divf %271, %272 : vector<8x32xf32>
    %274 = arith.addf %224, %14 : vector<8x32xf32>
    %275 = arith.mulf %267, %274 : vector<8x32xf32>
    %276 = arith.addf %261, %275 : vector<8x32xf32>
    %277 = math.tanh %276 : vector<8x32xf32>
    %278 = arith.subf %218, %277 : vector<8x32xf32>
    %279 = arith.mulf %273, %278 : vector<8x32xf32>
    %280 = arith.addf %277, %279 : vector<8x32xf32>
    %c240_133 = arith.constant 240 : index
    %c0_134 = arith.constant 0 : index
    %281 = vector.load %arg1[%c240_133, %c0_134] : memref<368x32xf32, #tpu.memory_space<vmem>>, vector<32x32xf32>
    %cst_135 = arith.constant dense<0.000000e+00> : vector<8x32xf32>
    %282 = tpu.matmul %280, %281, %cst_135 {dimension_numbers = #tpu.dot_dimension_numbers<[1], [0], [0], [1], [0, 0, 1, 1], [], []>} : vector<8x32xf32>, vector<32x32xf32>, vector<8x32xf32> -> vector<8x32xf32>
    %c272_136 = arith.constant 272 : index
    %c0_137 = arith.constant 0 : index
    %283 = vector.load %arg1[%c272_136, %c0_137] : memref<368x32xf32, #tpu.memory_space<vmem>>, vector<32x32xf32>
    %cst_138 = arith.constant dense<0.000000e+00> : vector<8x32xf32>
    %284 = tpu.matmul %280, %283, %cst_138 {dimension_numbers = #tpu.dot_dimension_numbers<[1], [0], [0], [1], [0, 0, 1, 1], [], []>} : vector<8x32xf32>, vector<32x32xf32>, vector<8x32xf32> -> vector<8x32xf32>
    %c304_139 = arith.constant 304 : index
    %c0_140 = arith.constant 0 : index
    %285 = vector.load %arg1[%c304_139, %c0_140] : memref<368x32xf32, #tpu.memory_space<vmem>>, vector<32x32xf32>
    %cst_141 = arith.constant dense<0.000000e+00> : vector<8x32xf32>
    %286 = tpu.matmul %280, %285, %cst_141 {dimension_numbers = #tpu.dot_dimension_numbers<[1], [0], [0], [1], [0, 0, 1, 1], [], []>} : vector<8x32xf32>, vector<32x32xf32>, vector<8x32xf32> -> vector<8x32xf32>
    %c48_142 = arith.constant 48 : index
    %c0_143 = arith.constant 0 : index
    %287 = vector.load %arg1[%c48_142, %c0_143] : memref<368x32xf32, #tpu.memory_space<vmem>>, vector<32x32xf32>
    %cst_144 = arith.constant dense<0.000000e+00> : vector<8x32xf32>
    %288 = tpu.matmul %252, %287, %cst_144 {dimension_numbers = #tpu.dot_dimension_numbers<[1], [0], [0], [1], [0, 0, 1, 1], [], []>} : vector<8x32xf32>, vector<32x32xf32>, vector<8x32xf32> -> vector<8x32xf32>
    %c80_145 = arith.constant 80 : index
    %c0_146 = arith.constant 0 : index
    %289 = vector.load %arg1[%c80_145, %c0_146] : memref<368x32xf32, #tpu.memory_space<vmem>>, vector<32x32xf32>
    %cst_147 = arith.constant dense<0.000000e+00> : vector<8x32xf32>
    %290 = tpu.matmul %252, %289, %cst_147 {dimension_numbers = #tpu.dot_dimension_numbers<[1], [0], [0], [1], [0, 0, 1, 1], [], []>} : vector<8x32xf32>, vector<32x32xf32>, vector<8x32xf32> -> vector<8x32xf32>
    %c112_148 = arith.constant 112 : index
    %c0_149 = arith.constant 0 : index
    %291 = vector.load %arg1[%c112_148, %c0_149] : memref<368x32xf32, #tpu.memory_space<vmem>>, vector<32x32xf32>
    %cst_150 = arith.constant dense<0.000000e+00> : vector<8x32xf32>
    %292 = tpu.matmul %252, %291, %cst_150 {dimension_numbers = #tpu.dot_dimension_numbers<[1], [0], [0], [1], [0, 0, 1, 1], [], []>} : vector<8x32xf32>, vector<32x32xf32>, vector<8x32xf32> -> vector<8x32xf32>
    %293 = vector.extract_strided_slice %20 {offsets = [32, 0], sizes = [8, 32], strides = [1, 1]} : vector<64x32xf32> to vector<8x32xf32>
    %294 = arith.addf %293, %288 : vector<8x32xf32>
    %295 = arith.negf %294 : vector<8x32xf32>
    %296 = math.exp %295 : vector<8x32xf32>
    %cst_151 = arith.constant 1.000000e+00 : f32
    %297 = vector.broadcast %cst_151 : f32 to vector<8x32xf32>
    %298 = arith.addf %297, %296 : vector<8x32xf32>
    %299 = arith.divf %297, %298 : vector<8x32xf32>
    %300 = vector.extract_strided_slice %25 {offsets = [32, 0], sizes = [8, 32], strides = [1, 1]} : vector<64x32xf32> to vector<8x32xf32>
    %301 = arith.addf %300, %290 : vector<8x32xf32>
    %302 = arith.negf %301 : vector<8x32xf32>
    %303 = math.exp %302 : vector<8x32xf32>
    %cst_152 = arith.constant 1.000000e+00 : f32
    %304 = vector.broadcast %cst_152 : f32 to vector<8x32xf32>
    %305 = arith.addf %304, %303 : vector<8x32xf32>
    %306 = arith.divf %304, %305 : vector<8x32xf32>
    %307 = vector.extract_strided_slice %30 {offsets = [32, 0], sizes = [8, 32], strides = [1, 1]} : vector<64x32xf32> to vector<8x32xf32>
    %308 = arith.addf %292, %2 : vector<8x32xf32>
    %309 = arith.mulf %299, %308 : vector<8x32xf32>
    %310 = arith.addf %307, %309 : vector<8x32xf32>
    %311 = math.tanh %310 : vector<8x32xf32>
    %312 = arith.subf %252, %311 : vector<8x32xf32>
    %313 = arith.mulf %306, %312 : vector<8x32xf32>
    %314 = arith.addf %311, %313 : vector<8x32xf32>
    %c144_153 = arith.constant 144 : index
    %c0_154 = arith.constant 0 : index
    %315 = vector.load %arg1[%c144_153, %c0_154] : memref<368x32xf32, #tpu.memory_space<vmem>>, vector<32x32xf32>
    %cst_155 = arith.constant dense<0.000000e+00> : vector<8x32xf32>
    %316 = tpu.matmul %314, %315, %cst_155 {dimension_numbers = #tpu.dot_dimension_numbers<[1], [0], [0], [1], [0, 0, 1, 1], [], []>} : vector<8x32xf32>, vector<32x32xf32>, vector<8x32xf32> -> vector<8x32xf32>
    %317 = arith.addf %316, %5 : vector<8x32xf32>
    %c176_156 = arith.constant 176 : index
    %c0_157 = arith.constant 0 : index
    %318 = vector.load %arg1[%c176_156, %c0_157] : memref<368x32xf32, #tpu.memory_space<vmem>>, vector<32x32xf32>
    %cst_158 = arith.constant dense<0.000000e+00> : vector<8x32xf32>
    %319 = tpu.matmul %314, %318, %cst_158 {dimension_numbers = #tpu.dot_dimension_numbers<[1], [0], [0], [1], [0, 0, 1, 1], [], []>} : vector<8x32xf32>, vector<32x32xf32>, vector<8x32xf32> -> vector<8x32xf32>
    %320 = arith.addf %319, %8 : vector<8x32xf32>
    %c208_159 = arith.constant 208 : index
    %c0_160 = arith.constant 0 : index
    %321 = vector.load %arg1[%c208_159, %c0_160] : memref<368x32xf32, #tpu.memory_space<vmem>>, vector<32x32xf32>
    %cst_161 = arith.constant dense<0.000000e+00> : vector<8x32xf32>
    %322 = tpu.matmul %314, %321, %cst_161 {dimension_numbers = #tpu.dot_dimension_numbers<[1], [0], [0], [1], [0, 0, 1, 1], [], []>} : vector<8x32xf32>, vector<32x32xf32>, vector<8x32xf32> -> vector<8x32xf32>
    %323 = arith.addf %322, %11 : vector<8x32xf32>
    %324 = arith.addf %317, %282 : vector<8x32xf32>
    %325 = arith.negf %324 : vector<8x32xf32>
    %326 = math.exp %325 : vector<8x32xf32>
    %cst_162 = arith.constant 1.000000e+00 : f32
    %327 = vector.broadcast %cst_162 : f32 to vector<8x32xf32>
    %328 = arith.addf %327, %326 : vector<8x32xf32>
    %329 = arith.divf %327, %328 : vector<8x32xf32>
    %330 = arith.addf %320, %284 : vector<8x32xf32>
    %331 = arith.negf %330 : vector<8x32xf32>
    %332 = math.exp %331 : vector<8x32xf32>
    %cst_163 = arith.constant 1.000000e+00 : f32
    %333 = vector.broadcast %cst_163 : f32 to vector<8x32xf32>
    %334 = arith.addf %333, %332 : vector<8x32xf32>
    %335 = arith.divf %333, %334 : vector<8x32xf32>
    %336 = arith.addf %286, %14 : vector<8x32xf32>
    %337 = arith.mulf %329, %336 : vector<8x32xf32>
    %338 = arith.addf %323, %337 : vector<8x32xf32>
    %339 = math.tanh %338 : vector<8x32xf32>
    %340 = arith.subf %280, %339 : vector<8x32xf32>
    %341 = arith.mulf %335, %340 : vector<8x32xf32>
    %342 = arith.addf %339, %341 : vector<8x32xf32>
    %c240_164 = arith.constant 240 : index
    %c0_165 = arith.constant 0 : index
    %343 = vector.load %arg1[%c240_164, %c0_165] : memref<368x32xf32, #tpu.memory_space<vmem>>, vector<32x32xf32>
    %cst_166 = arith.constant dense<0.000000e+00> : vector<8x32xf32>
    %344 = tpu.matmul %342, %343, %cst_166 {dimension_numbers = #tpu.dot_dimension_numbers<[1], [0], [0], [1], [0, 0, 1, 1], [], []>} : vector<8x32xf32>, vector<32x32xf32>, vector<8x32xf32> -> vector<8x32xf32>
    %c272_167 = arith.constant 272 : index
    %c0_168 = arith.constant 0 : index
    %345 = vector.load %arg1[%c272_167, %c0_168] : memref<368x32xf32, #tpu.memory_space<vmem>>, vector<32x32xf32>
    %cst_169 = arith.constant dense<0.000000e+00> : vector<8x32xf32>
    %346 = tpu.matmul %342, %345, %cst_169 {dimension_numbers = #tpu.dot_dimension_numbers<[1], [0], [0], [1], [0, 0, 1, 1], [], []>} : vector<8x32xf32>, vector<32x32xf32>, vector<8x32xf32> -> vector<8x32xf32>
    %c304_170 = arith.constant 304 : index
    %c0_171 = arith.constant 0 : index
    %347 = vector.load %arg1[%c304_170, %c0_171] : memref<368x32xf32, #tpu.memory_space<vmem>>, vector<32x32xf32>
    %cst_172 = arith.constant dense<0.000000e+00> : vector<8x32xf32>
    %348 = tpu.matmul %342, %347, %cst_172 {dimension_numbers = #tpu.dot_dimension_numbers<[1], [0], [0], [1], [0, 0, 1, 1], [], []>} : vector<8x32xf32>, vector<32x32xf32>, vector<8x32xf32> -> vector<8x32xf32>
    %c48_173 = arith.constant 48 : index
    %c0_174 = arith.constant 0 : index
    %349 = vector.load %arg1[%c48_173, %c0_174] : memref<368x32xf32, #tpu.memory_space<vmem>>, vector<32x32xf32>
    %cst_175 = arith.constant dense<0.000000e+00> : vector<8x32xf32>
    %350 = tpu.matmul %314, %349, %cst_175 {dimension_numbers = #tpu.dot_dimension_numbers<[1], [0], [0], [1], [0, 0, 1, 1], [], []>} : vector<8x32xf32>, vector<32x32xf32>, vector<8x32xf32> -> vector<8x32xf32>
    %c80_176 = arith.constant 80 : index
    %c0_177 = arith.constant 0 : index
    %351 = vector.load %arg1[%c80_176, %c0_177] : memref<368x32xf32, #tpu.memory_space<vmem>>, vector<32x32xf32>
    %cst_178 = arith.constant dense<0.000000e+00> : vector<8x32xf32>
    %352 = tpu.matmul %314, %351, %cst_178 {dimension_numbers = #tpu.dot_dimension_numbers<[1], [0], [0], [1], [0, 0, 1, 1], [], []>} : vector<8x32xf32>, vector<32x32xf32>, vector<8x32xf32> -> vector<8x32xf32>
    %c112_179 = arith.constant 112 : index
    %c0_180 = arith.constant 0 : index
    %353 = vector.load %arg1[%c112_179, %c0_180] : memref<368x32xf32, #tpu.memory_space<vmem>>, vector<32x32xf32>
    %cst_181 = arith.constant dense<0.000000e+00> : vector<8x32xf32>
    %354 = tpu.matmul %314, %353, %cst_181 {dimension_numbers = #tpu.dot_dimension_numbers<[1], [0], [0], [1], [0, 0, 1, 1], [], []>} : vector<8x32xf32>, vector<32x32xf32>, vector<8x32xf32> -> vector<8x32xf32>
    %355 = vector.extract_strided_slice %20 {offsets = [40, 0], sizes = [8, 32], strides = [1, 1]} : vector<64x32xf32> to vector<8x32xf32>
    %356 = arith.addf %355, %350 : vector<8x32xf32>
    %357 = arith.negf %356 : vector<8x32xf32>
    %358 = math.exp %357 : vector<8x32xf32>
    %cst_182 = arith.constant 1.000000e+00 : f32
    %359 = vector.broadcast %cst_182 : f32 to vector<8x32xf32>
    %360 = arith.addf %359, %358 : vector<8x32xf32>
    %361 = arith.divf %359, %360 : vector<8x32xf32>
    %362 = vector.extract_strided_slice %25 {offsets = [40, 0], sizes = [8, 32], strides = [1, 1]} : vector<64x32xf32> to vector<8x32xf32>
    %363 = arith.addf %362, %352 : vector<8x32xf32>
    %364 = arith.negf %363 : vector<8x32xf32>
    %365 = math.exp %364 : vector<8x32xf32>
    %cst_183 = arith.constant 1.000000e+00 : f32
    %366 = vector.broadcast %cst_183 : f32 to vector<8x32xf32>
    %367 = arith.addf %366, %365 : vector<8x32xf32>
    %368 = arith.divf %366, %367 : vector<8x32xf32>
    %369 = vector.extract_strided_slice %30 {offsets = [40, 0], sizes = [8, 32], strides = [1, 1]} : vector<64x32xf32> to vector<8x32xf32>
    %370 = arith.addf %354, %2 : vector<8x32xf32>
    %371 = arith.mulf %361, %370 : vector<8x32xf32>
    %372 = arith.addf %369, %371 : vector<8x32xf32>
    %373 = math.tanh %372 : vector<8x32xf32>
    %374 = arith.subf %314, %373 : vector<8x32xf32>
    %375 = arith.mulf %368, %374 : vector<8x32xf32>
    %376 = arith.addf %373, %375 : vector<8x32xf32>
    %c144_184 = arith.constant 144 : index
    %c0_185 = arith.constant 0 : index
    %377 = vector.load %arg1[%c144_184, %c0_185] : memref<368x32xf32, #tpu.memory_space<vmem>>, vector<32x32xf32>
    %cst_186 = arith.constant dense<0.000000e+00> : vector<8x32xf32>
    %378 = tpu.matmul %376, %377, %cst_186 {dimension_numbers = #tpu.dot_dimension_numbers<[1], [0], [0], [1], [0, 0, 1, 1], [], []>} : vector<8x32xf32>, vector<32x32xf32>, vector<8x32xf32> -> vector<8x32xf32>
    %379 = arith.addf %378, %5 : vector<8x32xf32>
    %c176_187 = arith.constant 176 : index
    %c0_188 = arith.constant 0 : index
    %380 = vector.load %arg1[%c176_187, %c0_188] : memref<368x32xf32, #tpu.memory_space<vmem>>, vector<32x32xf32>
    %cst_189 = arith.constant dense<0.000000e+00> : vector<8x32xf32>
    %381 = tpu.matmul %376, %380, %cst_189 {dimension_numbers = #tpu.dot_dimension_numbers<[1], [0], [0], [1], [0, 0, 1, 1], [], []>} : vector<8x32xf32>, vector<32x32xf32>, vector<8x32xf32> -> vector<8x32xf32>
    %382 = arith.addf %381, %8 : vector<8x32xf32>
    %c208_190 = arith.constant 208 : index
    %c0_191 = arith.constant 0 : index
    %383 = vector.load %arg1[%c208_190, %c0_191] : memref<368x32xf32, #tpu.memory_space<vmem>>, vector<32x32xf32>
    %cst_192 = arith.constant dense<0.000000e+00> : vector<8x32xf32>
    %384 = tpu.matmul %376, %383, %cst_192 {dimension_numbers = #tpu.dot_dimension_numbers<[1], [0], [0], [1], [0, 0, 1, 1], [], []>} : vector<8x32xf32>, vector<32x32xf32>, vector<8x32xf32> -> vector<8x32xf32>
    %385 = arith.addf %384, %11 : vector<8x32xf32>
    %386 = arith.addf %379, %344 : vector<8x32xf32>
    %387 = arith.negf %386 : vector<8x32xf32>
    %388 = math.exp %387 : vector<8x32xf32>
    %cst_193 = arith.constant 1.000000e+00 : f32
    %389 = vector.broadcast %cst_193 : f32 to vector<8x32xf32>
    %390 = arith.addf %389, %388 : vector<8x32xf32>
    %391 = arith.divf %389, %390 : vector<8x32xf32>
    %392 = arith.addf %382, %346 : vector<8x32xf32>
    %393 = arith.negf %392 : vector<8x32xf32>
    %394 = math.exp %393 : vector<8x32xf32>
    %cst_194 = arith.constant 1.000000e+00 : f32
    %395 = vector.broadcast %cst_194 : f32 to vector<8x32xf32>
    %396 = arith.addf %395, %394 : vector<8x32xf32>
    %397 = arith.divf %395, %396 : vector<8x32xf32>
    %398 = arith.addf %348, %14 : vector<8x32xf32>
    %399 = arith.mulf %391, %398 : vector<8x32xf32>
    %400 = arith.addf %385, %399 : vector<8x32xf32>
    %401 = math.tanh %400 : vector<8x32xf32>
    %402 = arith.subf %342, %401 : vector<8x32xf32>
    %403 = arith.mulf %397, %402 : vector<8x32xf32>
    %404 = arith.addf %401, %403 : vector<8x32xf32>
    %c240_195 = arith.constant 240 : index
    %c0_196 = arith.constant 0 : index
    %405 = vector.load %arg1[%c240_195, %c0_196] : memref<368x32xf32, #tpu.memory_space<vmem>>, vector<32x32xf32>
    %cst_197 = arith.constant dense<0.000000e+00> : vector<8x32xf32>
    %406 = tpu.matmul %404, %405, %cst_197 {dimension_numbers = #tpu.dot_dimension_numbers<[1], [0], [0], [1], [0, 0, 1, 1], [], []>} : vector<8x32xf32>, vector<32x32xf32>, vector<8x32xf32> -> vector<8x32xf32>
    %c272_198 = arith.constant 272 : index
    %c0_199 = arith.constant 0 : index
    %407 = vector.load %arg1[%c272_198, %c0_199] : memref<368x32xf32, #tpu.memory_space<vmem>>, vector<32x32xf32>
    %cst_200 = arith.constant dense<0.000000e+00> : vector<8x32xf32>
    %408 = tpu.matmul %404, %407, %cst_200 {dimension_numbers = #tpu.dot_dimension_numbers<[1], [0], [0], [1], [0, 0, 1, 1], [], []>} : vector<8x32xf32>, vector<32x32xf32>, vector<8x32xf32> -> vector<8x32xf32>
    %c304_201 = arith.constant 304 : index
    %c0_202 = arith.constant 0 : index
    %409 = vector.load %arg1[%c304_201, %c0_202] : memref<368x32xf32, #tpu.memory_space<vmem>>, vector<32x32xf32>
    %cst_203 = arith.constant dense<0.000000e+00> : vector<8x32xf32>
    %410 = tpu.matmul %404, %409, %cst_203 {dimension_numbers = #tpu.dot_dimension_numbers<[1], [0], [0], [1], [0, 0, 1, 1], [], []>} : vector<8x32xf32>, vector<32x32xf32>, vector<8x32xf32> -> vector<8x32xf32>
    %c48_204 = arith.constant 48 : index
    %c0_205 = arith.constant 0 : index
    %411 = vector.load %arg1[%c48_204, %c0_205] : memref<368x32xf32, #tpu.memory_space<vmem>>, vector<32x32xf32>
    %cst_206 = arith.constant dense<0.000000e+00> : vector<8x32xf32>
    %412 = tpu.matmul %376, %411, %cst_206 {dimension_numbers = #tpu.dot_dimension_numbers<[1], [0], [0], [1], [0, 0, 1, 1], [], []>} : vector<8x32xf32>, vector<32x32xf32>, vector<8x32xf32> -> vector<8x32xf32>
    %c80_207 = arith.constant 80 : index
    %c0_208 = arith.constant 0 : index
    %413 = vector.load %arg1[%c80_207, %c0_208] : memref<368x32xf32, #tpu.memory_space<vmem>>, vector<32x32xf32>
    %cst_209 = arith.constant dense<0.000000e+00> : vector<8x32xf32>
    %414 = tpu.matmul %376, %413, %cst_209 {dimension_numbers = #tpu.dot_dimension_numbers<[1], [0], [0], [1], [0, 0, 1, 1], [], []>} : vector<8x32xf32>, vector<32x32xf32>, vector<8x32xf32> -> vector<8x32xf32>
    %c112_210 = arith.constant 112 : index
    %c0_211 = arith.constant 0 : index
    %415 = vector.load %arg1[%c112_210, %c0_211] : memref<368x32xf32, #tpu.memory_space<vmem>>, vector<32x32xf32>
    %cst_212 = arith.constant dense<0.000000e+00> : vector<8x32xf32>
    %416 = tpu.matmul %376, %415, %cst_212 {dimension_numbers = #tpu.dot_dimension_numbers<[1], [0], [0], [1], [0, 0, 1, 1], [], []>} : vector<8x32xf32>, vector<32x32xf32>, vector<8x32xf32> -> vector<8x32xf32>
    %417 = vector.extract_strided_slice %20 {offsets = [48, 0], sizes = [8, 32], strides = [1, 1]} : vector<64x32xf32> to vector<8x32xf32>
    %418 = arith.addf %417, %412 : vector<8x32xf32>
    %419 = arith.negf %418 : vector<8x32xf32>
    %420 = math.exp %419 : vector<8x32xf32>
    %cst_213 = arith.constant 1.000000e+00 : f32
    %421 = vector.broadcast %cst_213 : f32 to vector<8x32xf32>
    %422 = arith.addf %421, %420 : vector<8x32xf32>
    %423 = arith.divf %421, %422 : vector<8x32xf32>
    %424 = vector.extract_strided_slice %25 {offsets = [48, 0], sizes = [8, 32], strides = [1, 1]} : vector<64x32xf32> to vector<8x32xf32>
    %425 = arith.addf %424, %414 : vector<8x32xf32>
    %426 = arith.negf %425 : vector<8x32xf32>
    %427 = math.exp %426 : vector<8x32xf32>
    %cst_214 = arith.constant 1.000000e+00 : f32
    %428 = vector.broadcast %cst_214 : f32 to vector<8x32xf32>
    %429 = arith.addf %428, %427 : vector<8x32xf32>
    %430 = arith.divf %428, %429 : vector<8x32xf32>
    %431 = vector.extract_strided_slice %30 {offsets = [48, 0], sizes = [8, 32], strides = [1, 1]} : vector<64x32xf32> to vector<8x32xf32>
    %432 = arith.addf %416, %2 : vector<8x32xf32>
    %433 = arith.mulf %423, %432 : vector<8x32xf32>
    %434 = arith.addf %431, %433 : vector<8x32xf32>
    %435 = math.tanh %434 : vector<8x32xf32>
    %436 = arith.subf %376, %435 : vector<8x32xf32>
    %437 = arith.mulf %430, %436 : vector<8x32xf32>
    %438 = arith.addf %435, %437 : vector<8x32xf32>
    %c144_215 = arith.constant 144 : index
    %c0_216 = arith.constant 0 : index
    %439 = vector.load %arg1[%c144_215, %c0_216] : memref<368x32xf32, #tpu.memory_space<vmem>>, vector<32x32xf32>
    %cst_217 = arith.constant dense<0.000000e+00> : vector<8x32xf32>
    %440 = tpu.matmul %438, %439, %cst_217 {dimension_numbers = #tpu.dot_dimension_numbers<[1], [0], [0], [1], [0, 0, 1, 1], [], []>} : vector<8x32xf32>, vector<32x32xf32>, vector<8x32xf32> -> vector<8x32xf32>
    %441 = arith.addf %440, %5 : vector<8x32xf32>
    %c176_218 = arith.constant 176 : index
    %c0_219 = arith.constant 0 : index
    %442 = vector.load %arg1[%c176_218, %c0_219] : memref<368x32xf32, #tpu.memory_space<vmem>>, vector<32x32xf32>
    %cst_220 = arith.constant dense<0.000000e+00> : vector<8x32xf32>
    %443 = tpu.matmul %438, %442, %cst_220 {dimension_numbers = #tpu.dot_dimension_numbers<[1], [0], [0], [1], [0, 0, 1, 1], [], []>} : vector<8x32xf32>, vector<32x32xf32>, vector<8x32xf32> -> vector<8x32xf32>
    %444 = arith.addf %443, %8 : vector<8x32xf32>
    %c208_221 = arith.constant 208 : index
    %c0_222 = arith.constant 0 : index
    %445 = vector.load %arg1[%c208_221, %c0_222] : memref<368x32xf32, #tpu.memory_space<vmem>>, vector<32x32xf32>
    %cst_223 = arith.constant dense<0.000000e+00> : vector<8x32xf32>
    %446 = tpu.matmul %438, %445, %cst_223 {dimension_numbers = #tpu.dot_dimension_numbers<[1], [0], [0], [1], [0, 0, 1, 1], [], []>} : vector<8x32xf32>, vector<32x32xf32>, vector<8x32xf32> -> vector<8x32xf32>
    %447 = arith.addf %446, %11 : vector<8x32xf32>
    %448 = arith.addf %441, %406 : vector<8x32xf32>
    %449 = arith.negf %448 : vector<8x32xf32>
    %450 = math.exp %449 : vector<8x32xf32>
    %cst_224 = arith.constant 1.000000e+00 : f32
    %451 = vector.broadcast %cst_224 : f32 to vector<8x32xf32>
    %452 = arith.addf %451, %450 : vector<8x32xf32>
    %453 = arith.divf %451, %452 : vector<8x32xf32>
    %454 = arith.addf %444, %408 : vector<8x32xf32>
    %455 = arith.negf %454 : vector<8x32xf32>
    %456 = math.exp %455 : vector<8x32xf32>
    %cst_225 = arith.constant 1.000000e+00 : f32
    %457 = vector.broadcast %cst_225 : f32 to vector<8x32xf32>
    %458 = arith.addf %457, %456 : vector<8x32xf32>
    %459 = arith.divf %457, %458 : vector<8x32xf32>
    %460 = arith.addf %410, %14 : vector<8x32xf32>
    %461 = arith.mulf %453, %460 : vector<8x32xf32>
    %462 = arith.addf %447, %461 : vector<8x32xf32>
    %463 = math.tanh %462 : vector<8x32xf32>
    %464 = arith.subf %404, %463 : vector<8x32xf32>
    %465 = arith.mulf %459, %464 : vector<8x32xf32>
    %466 = arith.addf %463, %465 : vector<8x32xf32>
    %c240_226 = arith.constant 240 : index
    %c0_227 = arith.constant 0 : index
    %467 = vector.load %arg1[%c240_226, %c0_227] : memref<368x32xf32, #tpu.memory_space<vmem>>, vector<32x32xf32>
    %cst_228 = arith.constant dense<0.000000e+00> : vector<8x32xf32>
    %468 = tpu.matmul %466, %467, %cst_228 {dimension_numbers = #tpu.dot_dimension_numbers<[1], [0], [0], [1], [0, 0, 1, 1], [], []>} : vector<8x32xf32>, vector<32x32xf32>, vector<8x32xf32> -> vector<8x32xf32>
    %c272_229 = arith.constant 272 : index
    %c0_230 = arith.constant 0 : index
    %469 = vector.load %arg1[%c272_229, %c0_230] : memref<368x32xf32, #tpu.memory_space<vmem>>, vector<32x32xf32>
    %cst_231 = arith.constant dense<0.000000e+00> : vector<8x32xf32>
    %470 = tpu.matmul %466, %469, %cst_231 {dimension_numbers = #tpu.dot_dimension_numbers<[1], [0], [0], [1], [0, 0, 1, 1], [], []>} : vector<8x32xf32>, vector<32x32xf32>, vector<8x32xf32> -> vector<8x32xf32>
    %c304_232 = arith.constant 304 : index
    %c0_233 = arith.constant 0 : index
    %471 = vector.load %arg1[%c304_232, %c0_233] : memref<368x32xf32, #tpu.memory_space<vmem>>, vector<32x32xf32>
    %cst_234 = arith.constant dense<0.000000e+00> : vector<8x32xf32>
    %472 = tpu.matmul %466, %471, %cst_234 {dimension_numbers = #tpu.dot_dimension_numbers<[1], [0], [0], [1], [0, 0, 1, 1], [], []>} : vector<8x32xf32>, vector<32x32xf32>, vector<8x32xf32> -> vector<8x32xf32>
    %c48_235 = arith.constant 48 : index
    %c0_236 = arith.constant 0 : index
    %473 = vector.load %arg1[%c48_235, %c0_236] : memref<368x32xf32, #tpu.memory_space<vmem>>, vector<32x32xf32>
    %cst_237 = arith.constant dense<0.000000e+00> : vector<8x32xf32>
    %474 = tpu.matmul %438, %473, %cst_237 {dimension_numbers = #tpu.dot_dimension_numbers<[1], [0], [0], [1], [0, 0, 1, 1], [], []>} : vector<8x32xf32>, vector<32x32xf32>, vector<8x32xf32> -> vector<8x32xf32>
    %c80_238 = arith.constant 80 : index
    %c0_239 = arith.constant 0 : index
    %475 = vector.load %arg1[%c80_238, %c0_239] : memref<368x32xf32, #tpu.memory_space<vmem>>, vector<32x32xf32>
    %cst_240 = arith.constant dense<0.000000e+00> : vector<8x32xf32>
    %476 = tpu.matmul %438, %475, %cst_240 {dimension_numbers = #tpu.dot_dimension_numbers<[1], [0], [0], [1], [0, 0, 1, 1], [], []>} : vector<8x32xf32>, vector<32x32xf32>, vector<8x32xf32> -> vector<8x32xf32>
    %c112_241 = arith.constant 112 : index
    %c0_242 = arith.constant 0 : index
    %477 = vector.load %arg1[%c112_241, %c0_242] : memref<368x32xf32, #tpu.memory_space<vmem>>, vector<32x32xf32>
    %cst_243 = arith.constant dense<0.000000e+00> : vector<8x32xf32>
    %478 = tpu.matmul %438, %477, %cst_243 {dimension_numbers = #tpu.dot_dimension_numbers<[1], [0], [0], [1], [0, 0, 1, 1], [], []>} : vector<8x32xf32>, vector<32x32xf32>, vector<8x32xf32> -> vector<8x32xf32>
    %479 = vector.extract_strided_slice %20 {offsets = [56, 0], sizes = [8, 32], strides = [1, 1]} : vector<64x32xf32> to vector<8x32xf32>
    %480 = arith.addf %479, %474 : vector<8x32xf32>
    %481 = arith.negf %480 : vector<8x32xf32>
    %482 = math.exp %481 : vector<8x32xf32>
    %cst_244 = arith.constant 1.000000e+00 : f32
    %483 = vector.broadcast %cst_244 : f32 to vector<8x32xf32>
    %484 = arith.addf %483, %482 : vector<8x32xf32>
    %485 = arith.divf %483, %484 : vector<8x32xf32>
    %486 = vector.extract_strided_slice %25 {offsets = [56, 0], sizes = [8, 32], strides = [1, 1]} : vector<64x32xf32> to vector<8x32xf32>
    %487 = arith.addf %486, %476 : vector<8x32xf32>
    %488 = arith.negf %487 : vector<8x32xf32>
    %489 = math.exp %488 : vector<8x32xf32>
    %cst_245 = arith.constant 1.000000e+00 : f32
    %490 = vector.broadcast %cst_245 : f32 to vector<8x32xf32>
    %491 = arith.addf %490, %489 : vector<8x32xf32>
    %492 = arith.divf %490, %491 : vector<8x32xf32>
    %493 = vector.extract_strided_slice %30 {offsets = [56, 0], sizes = [8, 32], strides = [1, 1]} : vector<64x32xf32> to vector<8x32xf32>
    %494 = arith.addf %478, %2 : vector<8x32xf32>
    %495 = arith.mulf %485, %494 : vector<8x32xf32>
    %496 = arith.addf %493, %495 : vector<8x32xf32>
    %497 = math.tanh %496 : vector<8x32xf32>
    %498 = arith.subf %438, %497 : vector<8x32xf32>
    %499 = arith.mulf %492, %498 : vector<8x32xf32>
    %500 = arith.addf %497, %499 : vector<8x32xf32>
    %c144_246 = arith.constant 144 : index
    %c0_247 = arith.constant 0 : index
    %501 = vector.load %arg1[%c144_246, %c0_247] : memref<368x32xf32, #tpu.memory_space<vmem>>, vector<32x32xf32>
    %cst_248 = arith.constant dense<0.000000e+00> : vector<8x32xf32>
    %502 = tpu.matmul %500, %501, %cst_248 {dimension_numbers = #tpu.dot_dimension_numbers<[1], [0], [0], [1], [0, 0, 1, 1], [], []>} : vector<8x32xf32>, vector<32x32xf32>, vector<8x32xf32> -> vector<8x32xf32>
    %503 = arith.addf %502, %5 : vector<8x32xf32>
    %c176_249 = arith.constant 176 : index
    %c0_250 = arith.constant 0 : index
    %504 = vector.load %arg1[%c176_249, %c0_250] : memref<368x32xf32, #tpu.memory_space<vmem>>, vector<32x32xf32>
    %cst_251 = arith.constant dense<0.000000e+00> : vector<8x32xf32>
    %505 = tpu.matmul %500, %504, %cst_251 {dimension_numbers = #tpu.dot_dimension_numbers<[1], [0], [0], [1], [0, 0, 1, 1], [], []>} : vector<8x32xf32>, vector<32x32xf32>, vector<8x32xf32> -> vector<8x32xf32>
    %506 = arith.addf %505, %8 : vector<8x32xf32>
    %c208_252 = arith.constant 208 : index
    %c0_253 = arith.constant 0 : index
    %507 = vector.load %arg1[%c208_252, %c0_253] : memref<368x32xf32, #tpu.memory_space<vmem>>, vector<32x32xf32>
    %cst_254 = arith.constant dense<0.000000e+00> : vector<8x32xf32>
    %508 = tpu.matmul %500, %507, %cst_254 {dimension_numbers = #tpu.dot_dimension_numbers<[1], [0], [0], [1], [0, 0, 1, 1], [], []>} : vector<8x32xf32>, vector<32x32xf32>, vector<8x32xf32> -> vector<8x32xf32>
    %509 = arith.addf %508, %11 : vector<8x32xf32>
    %510 = arith.addf %503, %468 : vector<8x32xf32>
    %511 = arith.negf %510 : vector<8x32xf32>
    %512 = math.exp %511 : vector<8x32xf32>
    %cst_255 = arith.constant 1.000000e+00 : f32
    %513 = vector.broadcast %cst_255 : f32 to vector<8x32xf32>
    %514 = arith.addf %513, %512 : vector<8x32xf32>
    %515 = arith.divf %513, %514 : vector<8x32xf32>
    %516 = arith.addf %506, %470 : vector<8x32xf32>
    %517 = arith.negf %516 : vector<8x32xf32>
    %518 = math.exp %517 : vector<8x32xf32>
    %cst_256 = arith.constant 1.000000e+00 : f32
    %519 = vector.broadcast %cst_256 : f32 to vector<8x32xf32>
    %520 = arith.addf %519, %518 : vector<8x32xf32>
    %521 = arith.divf %519, %520 : vector<8x32xf32>
    %522 = arith.addf %472, %14 : vector<8x32xf32>
    %523 = arith.mulf %515, %522 : vector<8x32xf32>
    %524 = arith.addf %509, %523 : vector<8x32xf32>
    %525 = math.tanh %524 : vector<8x32xf32>
    %526 = arith.subf %466, %525 : vector<8x32xf32>
    %527 = arith.mulf %521, %526 : vector<8x32xf32>
    %528 = arith.addf %525, %527 : vector<8x32xf32>
    %c336 = arith.constant 336 : index
    %c0_257 = arith.constant 0 : index
    %529 = vector.load %arg1[%c336, %c0_257] : memref<368x32xf32, #tpu.memory_space<vmem>>, vector<32x32xf32>
    %cst_258 = arith.constant dense<0.000000e+00> : vector<8x32xf32>
    %530 = tpu.matmul %528, %529, %cst_258 {dimension_numbers = #tpu.dot_dimension_numbers<[1], [0], [0], [1], [0, 0, 1, 1], [], []>} : vector<8x32xf32>, vector<32x32xf32>, vector<8x32xf32> -> vector<8x32xf32>
    %c8 = arith.constant 8 : index
    %c0_259 = arith.constant 0 : index
    %531 = vector.load %arg2[%c8, %c0_259] : memref<9x32xf32, #tpu.memory_space<vmem>>, vector<1x32xf32>
    %532 = vector.broadcast %531 : vector<1x32xf32> to vector<8x32xf32>
    %533 = arith.addf %530, %532 : vector<8x32xf32>
    %534 = vector.extract_strided_slice %533 {offsets = [0, 0], sizes = [8, 2], strides = [1, 1]} : vector<8x32xf32> to vector<8x2xf32>
    %cst_260 = arith.constant dense<0xFF800000> : vector<8xf32>
    %535 = vector.multi_reduction <maximumf>, %534, %cst_260 [1] : vector<8x2xf32> to vector<8xf32>
    %536 = vector.shape_cast %535 : vector<8xf32> to vector<8x1xf32>
    %537 = vector.broadcast %536 : vector<8x1xf32> to vector<8x2xf32>
    %538 = arith.subf %534, %537 : vector<8x2xf32>
    %539 = math.exp %538 : vector<8x2xf32>
    %cst_261 = arith.constant dense<0.000000e+00> : vector<8xf32>
    %540 = vector.multi_reduction <add>, %539, %cst_261 [1] : vector<8x2xf32> to vector<8xf32>
    %541 = vector.shape_cast %540 : vector<8xf32> to vector<8x1xf32>
    %542 = vector.broadcast %541 : vector<8x1xf32> to vector<8x2xf32>
    %543 = arith.divf %539, %542 : vector<8x2xf32>
    %c0_262 = arith.constant 0 : index
    %c0_263 = arith.constant 0 : index
    %544 = vector.load %arg3[%c0_262, %c0_263] : memref<8x2xf32, #tpu.memory_space<vmem>>, vector<8x2xf32>
    tpu.vector_store %arg3[%c0_262, %c0_263], %543 {strides = array<i32>} : memref<8x2xf32, #tpu.memory_space<vmem>>, vector<8x2xf32>,
    return
  }
}

</mosaic_0001>

<bundles_post_ra>
// kernel: tpu_custom_call.1
= control target key start
LH: loop header
LB: loop body
LE: loop exit
PB: predicated region body
PF: predicated region fallthrough
CT: control target
= control target key end

     0   :  { %vm54_vm0 = vcmask 130048   ;;  %v8002_v19 = vmov 0.0|0.0   ;;  %vm8003_vm1 = vmmov 0   ;;  %v9046_v32 = vmov 0.0   ;;  %s9042_s1 = inlined_call_operand.vmem [shape: f32[368,32], index: 1, kind: input, shape index: {}]   ;;  %s9043_s0 = inlined_call_operand.vmem [shape: f32[64,16], index: 0, kind: input, shape index: {}]   ;;  %s9044_s2 = inlined_call_operand.vmem [shape: f32[9,32], index: 2, kind: input, shape index: {}]   ;;  %s9045_s3 = inlined_call_operand.vmem [shape: f32[8,2], index: 3, kind: output, shape index: {}]  }
   0x1   :  { %v47_v0 = vld [vmem:[%s9042_s1] sm:$0xff]  ;;  %v48_v1 = vld [vmem:[%s9042_s1 + $0x8] sm:$0xff]  ;;  %v8038_v4 = vld [vmem:[%s9043_s0 + $0x30] sm:$0xff]  ;;  %vm412_vm2 = vcmask 261120   ;;  %vm5935_vm3 = vcmask 15360  }
   0x2   :  { %v39_v2 = vld [vmem:[%s9043_s0] sm:$0xff]  ;;  %v7330_v3 = vpack.c.bf16 %v48_v1, %v47_v0  ;;  %6492 = vmatprep.mubr.msk.f32.mxu1 %vm54_vm0, %v8038_v4  ;;  %v184_v5 = vld [vmem:[%s9042_s1 + $0x10] sm:$0xff]  ;;  %v185_v6 = vld [vmem:[%s9042_s1 + $0x18] sm:$0xff] }
   0x3   :  { %6483 = vmatprep.mubr.msk.f32.mxu0 %vm54_vm0, %v39_v2  ;;  %v296_v7 = vld [vmem:[%s9042_s1 + $0x20] sm:$0xff]  ;;  %v7334_v8 = vpack.c.bf16 %v185_v6, %v184_v5  ;;  %v297_v9 = vld [vmem:[%s9042_s1 + $0x28] sm:$0xff]  ;;  %v8060_v11 = vld [vmem:[%s9043_s0 + $0x38] sm:$0xff] }
   0x4   :  { %7331 = vmatprep.subr.bf16.mxu0 %v7330_v3  ;;  %7780 = vmatprep.subr.bf16.mxu1 %v7330_v3  ;;  %v40_v10 = vld [vmem:[%s9043_s0 + $0x8] sm:$0xff]  ;;  %v7338_v12 = vpack.c.bf16 %v297_v9, %v296_v7  ;;  %v41_v13 = vld [vmem:[%s9043_s0 + $0x10] sm:$0xff]  ;;  %v409_v15 = vld [vmem:[%s9042_s1 + $0xf8] sm:$0xff] }
   0x5   :  { %7333 = vmatpush3.bf16.msra.mxu0 %v7330_v3  ;;  %7781 = vmatpush3.bf16.msra.mxu1 %v7330_v3  ;;  %v408_v14 = vld [vmem:[%s9042_s1 + $0xf0] sm:$0xff]  ;;  %v42_v16 = vld [vmem:[%s9043_s0 + $0x18] sm:$0xff]  ;;  %v43_v17 = vld [vmem:[%s9043_s0 + $0x20] sm:$0xff] }
   0x6   :  { %7335 = vmatprep.subr.bf16.mxu1 %v7334_v8  ;;  %7339 = vmatprep.subr.bf16.mxu0 %v7338_v12  ;;  %v8082_v18 = vpack.c.bf16 %v409_v15, %v408_v14  ;;  %v410_v20 = vld [vmem:[%s9042_s1 + $0x100] sm:$0xff]  ;;  %v411_v21 = vld [vmem:[%s9042_s1 + $0x108] sm:$0xff]  ;;  %v564_v23 = vld [vmem:[%s9042_s1 + $0x30] sm:$0xff] }
   0x7   :  { %v44_v22 = vld [vmem:[%s9043_s0 + $0x28] sm:$0xff]  ;;  %v565_v24 = vld [vmem:[%s9042_s1 + $0x38] sm:$0xff]  ;;  %v8106_v25 = vpack.c.bf16 %v411_v21, %v410_v20  ;;  %v566_v27 = vld [vmem:[%s9042_s1 + $0x40] sm:$0xff] }
   0x8   :  { %6484 = vmatmul.mubr.msk.f32.vlgmr.msra.gmra.mrb[0].mxu0 %vm54_vm0, %v40_v10  ;;  %6493 = vmatmul.mubr.msk.f32.vlgmr.msra.gmra.mrb[0].mxu1 %vm54_vm0, %v8060_v11  ;;  %v8113_v26 = vpack.c.bf16 %v565_v24, %v564_v23  ;;  %v567_v28 = vld [vmem:[%s9042_s1 + $0x48] sm:$0xff]  ;;  %v486_v29 = vld [vmem:[%s9042_s1 + $0x110] sm:$0xff]  ;;  %v487_v30 = vld [vmem:[%s9042_s1 + $0x118] sm:$0xff] }
   0x9   :  { %7337 = vmatpush3.bf16.msra.mxu1 %v7334_v8  ;;  %7341 = vmatpush3.bf16.msra.mxu0 %v7338_v12  ;;  %v8136_v31 = vpack.c.bf16 %v567_v28, %v566_v27  ;;  %v8144_v33 = vpack.c.bf16 %v487_v30, %v486_v29  ;;  %v488_v34 = vld [vmem:[%s9042_s1 + $0x120] sm:$0xff]  ;;  %v489_v35 = vld [vmem:[%s9042_s1 + $0x128] sm:$0xff]  ;;  %v638_v37 = vld [vmem:[%s9042_s1 + $0x50] sm:$0xff] }
   0xa   :  { %6486 = vmatprep.mubr.msk.f32.mxu0 %vm54_vm0, %v41_v13  ;;  %6499 = vmatprep.mubr.msk.f32.mxu1 %vm54_vm0, %v39_v2  ;;  %v8159_v36 = vpack.c.bf16 %v489_v35, %v488_v34  ;;  %v639_v38 = vld [vmem:[%s9042_s1 + $0x58] sm:$0xff]  ;;  %v712_v39 = vld [vmem:[%s9042_s1 + $0x70] sm:$0xff]  ;;  %v640_v42 = vld [vmem:[%s9042_s1 + $0x60] sm:$0xff] }
   0xb   :  { %7342 = vmatprep.subr.bf16.mxu1 %v8002_v19  ;;  %7354 = vmatprep.subr.bf16.mxu0 %v8002_v19  ;;  %v713_v40 = vld [vmem:[%s9042_s1 + $0x78] sm:$0xff]  ;;  %v8181_v41 = vpack.c.bf16 %v639_v38, %v638_v37  ;;  %v641_v43 = vld [vmem:[%s9042_s1 + $0x68] sm:$0xff]  ;;  %v714_v45 = vld [vmem:[%s9042_s1 + $0x80] sm:$0xff] }
   0xc   :  { %6487 = vmatmul.mubr.msk.f32.gmra.mrb[2].mxu0 %vm54_vm0, %v42_v16  ;;  %6500 = vmatmul.mubr.msk.f32.vlgmr.msra.gmra.mrb[2].mxu1 %vm54_vm0, %v40_v10  ;;  %v8190_v44 = vpack.c.bf16 %v713_v40, %v712_v39  ;;  %v715_v46 = vld [vmem:[%s9042_s1 + $0x88] sm:$0xff]  ;;  %v8201_v47 = vpack.c.bf16 %v641_v43, %v640_v42  ;;  %v806_v49 = vld [vmem:[%s9042_s1 + $0x90] sm:$0xff]  ;;  %v807_v50 = vld [vmem:[%s9042_s1 + $0x98] sm:$0xff] }
   0xd   :  { %6489 = vmatprep.mubr.msk.f32.mxu0 %vm54_vm0, %v43_v17  ;;  %6502 = vmatprep.mubr.msk.f32.mxu1 %vm54_vm0, %v41_v13  ;;  %v8207_v48 = vpack.c.bf16 %v715_v46, %v714_v45  ;;  %v8228_v51 = vpack.c.bf16 %v807_v50, %v806_v49  ;;  %v957_v52 = vld [vmem:[%s9042_s1 + $0xd0] sm:$0xff]  ;;  %v958_v53 = vld [vmem:[%s9042_s1 + $0xd8] sm:$0xff]  ;;  %v808_v55 = vld [vmem:[%s9042_s1 + $0xa0] sm:$0xff] }
   0xe   :  { %7344 = vmatpush3.bf16.msra.mxu1 %v8082_v18  ;;  %v8236_v54 = vpack.c.bf16 %v958_v53, %v957_v52  ;;  %v809_v56 = vld [vmem:[%s9042_s1 + $0xa8] sm:$0xff]  ;;  %v959_v58 = vld [vmem:[%s9042_s1 + $0xe0] sm:$0xff] }
   0xf   :  { %7345 = vmatprep.subr.bf16.mxu1 %v8002_v19  ;;  %v8247_v57 = vpack.c.bf16 %v809_v56, %v808_v55  ;;  %v960_v59 = vld [vmem:[%s9042_s1 + $0xe8] sm:$0xff]  ;;  %v5957_v61 = vld [vmem:[%s9044_s2] ss:$0 sm:$0xff]  ;;  %v5966_v5 = vld [vmem:[%s9044_s2 + $0x1] ss:$0 sm:$0xff] }
  0x10   :  { %6490 = vmatmul.mubr.msk.f32.gmra.mrb[4].mxu0 %vm54_vm0, %v44_v22  ;;  %6503 = vmatmul.mubr.msk.f32.gmra.mrb[4].mxu1 %vm54_vm0, %v42_v16  ;;  %v8256_v60 = vpack.c.bf16 %v960_v59, %v959_v58 }
  0x11   :  { %6505 = vmatprep.mubr.msk.f32.mxu1 %vm54_vm0, %v43_v17  ;;  %6515 = vmatprep.mubr.msk.f32.mxu0 %vm54_vm0, %v39_v2 }
  0x12   :  { %7347 = vmatpush3.bf16.msra.mxu1 %v8106_v25 }
  0x13   :  { %7348 = vmatprep.subr.bf16.mxu1 %v8002_v19 }
  0x14   :  { %6506 = vmatmul.mubr.msk.f32.gmra.mrb[6].mxu1 %vm54_vm0, %v44_v22  ;;  %6516 = vmatmul.mubr.msk.f32.vlgmr.msra.gmra.mrb[6].mxu0 %vm54_vm0, %v40_v10 }
  0x15   :  { %7356 = vmatpush3.bf16.msra.mxu0 %v8113_v26  ;;  %6508 = vmatprep.mubr.msk.f32.mxu1 %vm54_vm0, %v8038_v4 }
  0x16   :  { %6518 = vmatprep.mubr.msk.f32.mxu0 %vm54_vm0, %v41_v13  ;;  %7357 = vmatprep.subr.bf16.mxu0 %v8002_v19 }
  0x18   :  { %6509 = vmatmul.mubr.msk.f32.gmra.mrb[8].mxu1 %vm54_vm0, %v8060_v11  ;;  %6519 = vmatmul.mubr.msk.f32.gmra.mrb[8].mxu0 %vm54_vm0, %v42_v16 }
  0x19   :  { %6521 = vmatprep.mubr.msk.f32.mxu0 %vm54_vm0, %v43_v17  ;;  %6535 = vmatprep.mubr.msk.f32.mxu1 %vm8003_vm1, %v9046_v32 }
  0x1a   :  { %7359 = vmatpush3.bf16.msra.mxu0 %v8136_v31 }
  0x1b   :  { %7366 = vmatprep.subr.bf16.mxu0 %v8002_v19 }
  0x1c   :  { %6522 = vmatmul.mubr.msk.f32.gmra.mrb[10].mxu0 %vm54_vm0, %v44_v22  ;;  %6536 = vmatmul.mubr.f32.vlgmr.msra.gmra.mrb[10].mxu1 %v9046_v32  ;;  %v5975_v22 = vld [vmem:[%s9044_s2 + $0x2] ss:$0 sm:$0xff] }
  0x1d   :  { %7350 = vmatpush3.bf16.msra.mxu1 %v8144_v33  ;;  %6524 = vmatprep.mubr.msk.f32.mxu0 %vm54_vm0, %v8038_v4 }
  0x1e   :  { %7351 = vmatprep.subr.bf16.mxu1 %v8002_v19  ;;  %6546 = vmatprep.mubr.msk.f32.mxu1 %vm8003_vm1, %v9046_v32 }
  0x20   :  { %6525 = vmatmul.mubr.msk.f32.gmra.mrb[12].mxu0 %vm54_vm0, %v8060_v11 }
  0x21   :  { %7353 = vmatpush3.bf16.msra.mxu1 %v8159_v36  ;;  %6557 = vmatprep.mubr.msk.f32.mxu0 %vm8003_vm1, %v9046_v32 }
  0x22   :  { %7360 = vmatprep.subr.bf16.mxu1 %v8002_v19 }
  0x24   :  { %6547 = vmatmul.mubr.f32.vlgmr.msra.gmra.mrb[12].mxu1 %v9046_v32  ;;  %6558 = vmatmul.mubr.f32.vlgmr.msra.gmra.mrb[14].mxu0 %v9046_v32 }
  0x25   :  { %7362 = vmatpush3.bf16.msra.mxu1 %v8181_v41  ;;  %6568 = vmatprep.mubr.msk.f32.mxu1 %vm8003_vm1, %v9046_v32 }
  0x26   :  { %7363 = vmatprep.subr.bf16.mxu1 %v8002_v19  ;;  %7368 = vmatpush3.bf16.msra.mxu0 %v8190_v44 }
  0x27   :  { %7369 = vmatprep.subr.bf16.mxu0 %v8002_v19  ;;  %6579 = vmatprep.mubr.msk.f32.mxu0 %vm8003_vm1, %v9046_v32 }
  0x29   :  { %7365 = vmatpush3.bf16.msra.mxu1 %v8201_v47 }
  0x2a   :  { %7371 = vmatpush3.bf16.msra.mxu0 %v8207_v48  ;;  %7372 = vmatprep.subr.bf16.mxu1 %v8002_v19 }
  0x2b   :  { %7384 = vmatprep.subr.bf16.mxu0 %v8002_v19 }
  0x2c   :  { %6569 = vmatmul.mubr.f32.vlgmr.msra.gmra.mrb[14].mxu1 %v9046_v32 }
  0x2d   :  { %6580 = vmatmul.mubr.f32.vlgmr.msra.gmra.mrb[16].mxu0 %v9046_v32  ;;  %6590 = vmatprep.mubr.msk.f32.mxu1 %vm8003_vm1, %v9046_v32 }
  0x2e   :  { %6612 = vmatprep.mubr.msk.f32.mxu0 %vm8003_vm1, %v9046_v32  ;;  %7374 = vmatpush3.bf16.msra.mxu1 %v8228_v51 }
  0x2f   :  { %7386 = vmatpush3.bf16.msra.mxu0 %v8236_v54  ;;  %7375 = vmatprep.subr.bf16.mxu1 %v8002_v19 }
  0x30   :  { %7387 = vmatprep.subr.bf16.mxu0 %v8002_v19 }
  0x32   :  { %7377 = vmatpush3.bf16.msra.mxu1 %v8247_v57 }
  0x33   :  { %7389 = vmatpush3.bf16.msra.mxu0 %v8256_v60  ;;  %7378 = vmatprep.subr.bf16.mxu1 %v8002_v19 }
  0x34   :  { %7390 = vmatprep.subr.bf16.mxu0 %v8002_v19 }
  0xdb   :  { %v6485_v62 = vpop.f32.mrb[0].mxu0  ;;  %v6494_v63 = vpop.f32.mrb[0].mxu1 }
  0xdc   :  { %v8265_v0 = vadd.f32 %v6485_v62, %v5957_v61  ;;  %v145_v1 = vpop.f32.mrb[1].mxu0  ;;  %v8267_v2 = vadd.f32 %v6494_v63, %v5957_v61  ;;  %v175_v3 = vpop.f32.mrb[1].mxu1 }
  0xdd   :  { %v8269_v4 = vadd.f32 %v5957_v61, %v175_v3  ;;  %v146_v62 = vadd.f32 %v5957_v61, %v145_v1 }
  0xdf   :  { %v6488_v6 = vpop.f32.mrb[2].mxu0  ;;  %v6501_v7 = vpop.f32.mrb[2].mxu1 }
  0xe0   :  { %v8274_v8 = vadd.f32 %v6488_v6, %v5957_v61  ;;  %v155_v9 = vpop.f32.mrb[3].mxu0  ;;  %v8276_v10 = vadd.f32 %v6501_v7, %v5966_v5  ;;  %v257_v11 = vpop.f32.mrb[3].mxu1 }
  0xe1   :  { %v8278_v12 = vadd.f32 %v5957_v61, %v155_v9  ;;  %v258_v9 = vadd.f32 %v5966_v5, %v257_v11 }
  0xe3   :  { %v6491_v13 = vpop.f32.mrb[4].mxu0  ;;  %v6504_v14 = vpop.f32.mrb[4].mxu1 }
  0xe4   :  { %v8280_v15 = vadd.f32 %v6491_v13, %v5957_v61  ;;  %v165_v16 = vpop.f32.mrb[5].mxu0  ;;  %v8282_v17 = vadd.f32 %v6504_v14, %v5966_v5  ;;  %v267_v20 = vpop.f32.mrb[5].mxu1 }
  0xe5   :  { %v8284_v21 = vadd.f32 %v5957_v61, %v165_v16  ;;  %v8289_v23 = vadd.f32 %v5966_v5, %v267_v20  ;;  %v8316_v61 = vld [vmem:[%s9044_s2 + $0x3] ss:$0 sm:$0xff] }
  0xe7   :  { %v6517_v24 = vpop.f32.mrb[6].mxu0  ;;  %v6507_v27 = vpop.f32.mrb[6].mxu1 }
  0xe8   :  { %v8291_v28 = vadd.f32 %v6517_v24, %v5975_v22  ;;  %v369_v29 = vpop.f32.mrb[7].mxu0  ;;  %v8293_v30 = vadd.f32 %v6507_v27, %v5966_v5  ;;  %v277_v34 = vpop.f32.mrb[7].mxu1 }
  0xe9   :  { %v8295_v35 = vadd.f32 %v5966_v5, %v277_v34 }
  0xeb   :  { %v6520_v37 = vpop.f32.mrb[8].mxu0  ;;  %v6510_v38 = vpop.f32.mrb[8].mxu1 }
  0xec   :  { %v8297_v39 = vadd.f32 %v6520_v37, %v5975_v22  ;;  %v379_v40 = vpop.f32.mrb[9].mxu0  ;;  %v8299_v42 = vadd.f32 %v6510_v38, %v5966_v5  ;;  %v287_v43 = vpop.f32.mrb[9].mxu1 }
  0xed   :  { %v8301_v45 = vadd.f32 %v5975_v22, %v379_v40  ;;  %v8303_v46 = vadd.f32 %v5966_v5, %v287_v43  ;;  %v370_v5 = vadd.f32 %v5975_v22, %v369_v29  ;;  %v561_v29 = vld [vmem:[%s9042_s1 + $0x138] sm:$0xff] }
  0xef   :  { %v6523_v49 = vpop.f32.mrb[10].mxu0 }
  0xf0   :  { %v8305_v50 = vadd.f32 %v6523_v49, %v5975_v22  ;;  %v389_v52 = vpop.f32.mrb[11].mxu0 }
  0xf1   :  { %v8307_v53 = vadd.f32 %v5975_v22, %v389_v52 }
  0xf3   :  { %v6526_v55 = vpop.f32.mrb[12].mxu0 }
  0xf4   :  { %v8309_v56 = vadd.f32 %v6526_v55, %v5975_v22  ;;  %v399_v58 = vpop.f32.mrb[13].mxu0 }
  0xf5   :  { %v8311_v59 = vadd.f32 %v5975_v22, %v399_v58  ;;  %v883_v58 = vld [vmem:[%s9042_s1 + $0xb0] sm:$0xff] }
  0xf6   :  { %v560_v22 = vld [vmem:[%s9042_s1 + $0x130] sm:$0xff] }
  0xf7   :  { %v634_v63 = vpop.f32.mrb[14].mxu0 }
  0xf8   :  { %v716_v3 = vadd.f32 %v634_v63, %v146_v62  ;;  %v6559_v6 = vpop.f32.mrb[15].mxu0  ;;  %v884_v62 = vld [vmem:[%s9042_s1 + $0xb8] sm:$0xff] }
  0xf9   :  { %v8331_v6 = vpack.c.bf16 %v884_v62, %v883_v58 }
  0xfa   :  { %v5984_v7 = vmul.f32 -1.442695, %v716_v3 }
  0xfc   :  { %7833 = vpow2.f32 %v5984_v7 }
  0xff   :  { %v708_v13 = vpop.f32.mrb[14].mxu1 }
 0x100   :  { %v723_v14 = vadd.f32 %v708_v13, %v258_v9  ;;  %v6570_v16 = vpop.f32.mrb[15].mxu1  ;;  %v796_v20 = vpop.f32.mrb[16].mxu0  ;;  %v885_v9 = vld [vmem:[%s9042_s1 + $0xc0] sm:$0xff]  ;;  %v886_v13 = vld [vmem:[%s9042_s1 + $0xc8] sm:$0xff] }
 0x101   :  { %v6581_v24 = vpop.f32.mrb[17].mxu0  ;;  %v797_v1 = vadd.f32 %v8316_v61, %v796_v20  ;;  %v562_v16 = vld [vmem:[%s9042_s1 + $0x140] sm:$0xff]  ;;  %v563_v20 = vld [vmem:[%s9042_s1 + $0x148] sm:$0xff] }
 0x102   :  { %v5985_v27 = vmul.f32 -1.442695, %v723_v14  ;;  %v8341_v14 = vpack.c.bf16 %v561_v29, %v560_v22  ;;  %v8354_v24 = vpack.c.bf16 %v886_v13, %v885_v9  ;;  %v8405_v13 = vld [vmem:[%s9044_s2 + $0x6] ss:$0 sm:$0xff] }
 0x104   :  { %7835 = vpow2.f32 %v5985_v27  ;;  %v8360_v27 = vpack.c.bf16 %v563_v20, %v562_v16 }
 0x106   :  { %v7834_v34 = vpop.eup %7833 }
 0x107   :  { %v720_v37 = vadd.f32 1.0, %v7834_v34  ;;  %v8387_v34 = vld [vmem:[%s9044_s2 + $0x4] ss:$0 sm:$0xff] }
 0x109   :  { %7837 = vrcp.f32 %v720_v37 }
 0x10e   :  { %v7836_v38 = vpop.eup %7835 }
 0x10f   :  { %v727_v43 = vadd.f32 1.0, %v7836_v38 }
 0x113   :  { %v7838_v40 = vpop.eup %7837 }
 0x114   :  { %v800_v11 = vmul.f32 %v7838_v40, %v797_v1 }
 0x116   :  { %v801_v49 = vadd.f32 %v800_v11, %v370_v5 }
 0x118   :  { %7839 = vtanh.f32 %v801_v49 }
 0x119   :  { %7841 = vrcp.f32 %v727_v43  ;;  %v8393_v43 = vld [vmem:[%s9044_s2 + $0x5] ss:$0 sm:$0xff] }
 0x122   :  { %v7840_v52 = vpop.eup %7839 }
 0x123   :  { %v803_v55 = vsub.f32 0.0, %v7840_v52  ;;  %v7842_v63 = vpop.eup %7841 }
 0x125   :  { %v804_v3 = vmul.f32 %v7842_v63, %v803_v55 }
 0x127   :  { %v8333_v7 = vadd.f32 %v7840_v52, %v804_v3  ;;  %v8399_v3 = vld [vmem:[%s9044_s2 + $0x7] ss:$0 sm:$0xff] }
 0x129   :  { %6591 = vmatmul.mubr.msk.f32.vlgmr.msra.gmra.mrb[10].mxu1 %vm412_vm2, %v8333_v7  ;;  %6613 = vmatmul.mubr.msk.f32.vlgmr.msra.gmra.mrb[18].mxu0 %vm412_vm2, %v8333_v7 }
 0x12a   :  { %7380 = vmatpush3.bf16.msra.mxu1 %v8331_v6  ;;  %6601 = vmatprep.mubr.msk.f32.mxu1 %vm8003_vm1, %v9046_v32 }
 0x12b   :  { %7381 = vmatprep.subr.bf16.mxu1 %v8002_v19  ;;  %7392 = vmatpush3.bf16.msra.mxu0 %v8341_v14 }
 0x12c   :  { %7393 = vmatprep.subr.bf16.mxu0 %v8002_v19  ;;  %6623 = vmatprep.mubr.msk.f32.mxu0 %vm8003_vm1, %v9046_v32 }
 0x12e   :  { %7383 = vmatpush3.bf16.msra.mxu1 %v8354_v24 }
 0x12f   :  { %7395 = vmatpush3.bf16.msra.mxu0 %v8360_v27  ;;  %7396 = vmatprep.subr.bf16.mxu1 %v8002_v19 }
 0x130   :  { %7402 = vmatprep.subr.bf16.mxu0 %v8002_v19 }
 0x131   :  { %6602 = vmatmul.mubr.msk.f32.vlgmr.msra.gmra.mrb[12].mxu1 %vm412_vm2, %v8333_v7 }
 0x132   :  { %6624 = vmatmul.mubr.f32.vlgmr.msra.gmra.mrb[20].mxu0 %v9046_v32  ;;  %7398 = vmatpush3.bf16.msra.mxu1 %v8082_v18 }
 0x133   :  { %7404 = vmatpush3.bf16.msra.mxu0 %v8144_v33  ;;  %7399 = vmatprep.subr.bf16.mxu1 %v8002_v19 }
 0x134   :  { %7405 = vmatprep.subr.bf16.mxu0 %v8002_v19  ;;  %6634 = vmatprep.mubr.msk.f32.mxu1 %vm8003_vm1, %v9046_v32 }
 0x135   :  { %6645 = vmatprep.mubr.msk.f32.mxu0 %vm8003_vm1, %v9046_v32 }
 0x136   :  { %7401 = vmatpush3.bf16.msra.mxu1 %v8106_v25 }
 0x137   :  { %7407 = vmatpush3.bf16.msra.mxu0 %v8159_v36  ;;  %7408 = vmatprep.subr.bf16.mxu1 %v8002_v19 }
 0x138   :  { %7414 = vmatprep.subr.bf16.mxu0 %v8002_v19 }
 0x1fc   :  { %v879_v37 = vpop.f32.mrb[10].mxu1  ;;  %v1027_v1 = vpop.f32.mrb[18].mxu0 }
 0x1fd   :  { %v880_v38 = vadd.f32 %v8387_v34, %v879_v37  ;;  %v6592_v40 = vpop.f32.mrb[11].mxu1  ;;  %v6614_v5 = vpop.f32.mrb[19].mxu0  ;;  %v1028_v37 = vadd.f32 %v8405_v13, %v1027_v1 }
 0x1ff   :  { %v5989_v11 = vmul.f32 -1.442695, %v880_v38 }
 0x201   :  { %7843 = vpow2.f32 %v5989_v11 }
 0x204   :  { %v953_v49 = vpop.f32.mrb[12].mxu1 }
 0x205   :  { %v954_v52 = vadd.f32 %v8393_v43, %v953_v49  ;;  %v6603_v55 = vpop.f32.mrb[13].mxu1  ;;  %v1111_v58 = vpop.f32.mrb[20].mxu0 }
 0x206   :  { %v6625_v62 = vpop.f32.mrb[21].mxu0  ;;  %v1112_v9 = vadd.f32 %v8399_v3, %v1111_v58 }
 0x207   :  { %v5990_v63 = vmul.f32 -1.442695, %v954_v52 }
 0x209   :  { %7845 = vpow2.f32 %v5990_v63 }
 0x20b   :  { %v7844_v22 = vpop.eup %7843 }
 0x20c   :  { %v1035_v29 = vadd.f32 1.0, %v7844_v22 }
 0x20e   :  { %7847 = vrcp.f32 %v1035_v29 }
 0x213   :  { %v7846_v16 = vpop.eup %7845 }
 0x214   :  { %v1042_v40 = vadd.f32 1.0, %v7846_v16 }
 0x218   :  { %v7848_v20 = vpop.eup %7847 }
 0x219   :  { %v1115_v38 = vmul.f32 %v7848_v20, %v1112_v9 }
 0x21b   :  { %v1116_v5 = vadd.f32 %v1115_v38, %v1028_v37 }
 0x21d   :  { %7849 = vtanh.f32 %v1116_v5 }
 0x21e   :  { %7851 = vrcp.f32 %v1042_v40 }
 0x227   :  { %v7850_v11 = vpop.eup %7849 }
 0x228   :  { %v1118_v49 = vsub.f32 0.0, %v7850_v11  ;;  %v7852_v52 = vpop.eup %7851 }
 0x22a   :  { %v1119_v55 = vmul.f32 %v7852_v52, %v1118_v49 }
 0x22c   :  { %v8408_v62 = vadd.f32 %v7850_v11, %v1119_v55 }
 0x22e   :  { %6635 = vmatmul.mubr.msk.f32.vlgmr.msra.gmra.mrb[16].mxu1 %vm412_vm2, %v8408_v62  ;;  %6646 = vmatmul.mubr.msk.f32.vlgmr.msra.gmra.mrb[22].mxu0 %vm412_vm2, %v8408_v62 }
 0x22f   :  { %7410 = vmatpush3.bf16.msra.mxu1 %v8113_v26  ;;  %7416 = vmatpush3.bf16.msra.mxu0 %v8181_v41 }
 0x230   :  { %7411 = vmatprep.subr.bf16.mxu1 %v8002_v19  ;;  %7417 = vmatprep.subr.bf16.mxu0 %v8002_v19 }
 0x231   :  { %6656 = vmatprep.mubr.msk.f32.mxu1 %vm8003_vm1, %v9046_v32  ;;  %6667 = vmatprep.mubr.msk.f32.mxu0 %vm8003_vm1, %v9046_v32 }
 0x233   :  { %7413 = vmatpush3.bf16.msra.mxu1 %v8136_v31  ;;  %7419 = vmatpush3.bf16.msra.mxu0 %v8201_v47 }
 0x234   :  { %7420 = vmatprep.subr.bf16.mxu1 %v8002_v19  ;;  %7432 = vmatprep.subr.bf16.mxu0 %v8002_v19 }
 0x236   :  { %6657 = vmatmul.mubr.msk.f32.vlgmr.msra.gmra.mrb[18].mxu1 %vm412_vm2, %v8333_v7  ;;  %6668 = vmatmul.mubr.msk.f32.vlgmr.msra.gmra.mrb[24].mxu0 %vm412_vm2, %v8333_v7 }
 0x237   :  { %7422 = vmatpush3.bf16.msra.mxu1 %v8190_v44  ;;  %6678 = vmatprep.mubr.msk.f32.mxu1 %vm8003_vm1, %v9046_v32 }
 0x238   :  { %7423 = vmatprep.subr.bf16.mxu1 %v8002_v19  ;;  %7434 = vmatpush3.bf16.msra.mxu0 %v8331_v6 }
 0x239   :  { %7435 = vmatprep.subr.bf16.mxu0 %v8002_v19  ;;  %6700 = vmatprep.mubr.msk.f32.mxu0 %vm8003_vm1, %v9046_v32 }
 0x23b   :  { %7425 = vmatpush3.bf16.msra.mxu1 %v8207_v48 }
 0x23c   :  { %7426 = vmatprep.subr.bf16.mxu1 %v8002_v19  ;;  %7437 = vmatpush3.bf16.msra.mxu0 %v8354_v24 }
 0x23d   :  { %7438 = vmatprep.subr.bf16.mxu0 %v8002_v19 }
 0x23e   :  { %6679 = vmatmul.mubr.msk.f32.vlgmr.msra.gmra.mrb[20].mxu1 %vm412_vm2, %v8333_v7 }
 0x23f   :  { %7428 = vmatpush3.bf16.msra.mxu1 %v8228_v51  ;;  %6689 = vmatprep.mubr.msk.f32.mxu1 %vm8003_vm1, %v9046_v32 }
 0x240   :  { %7429 = vmatprep.subr.bf16.mxu1 %v8002_v19 }
 0x243   :  { %7431 = vmatpush3.bf16.msra.mxu1 %v8247_v57 }
 0x244   :  { %7444 = vmatprep.subr.bf16.mxu1 %v8002_v19 }
 0x309   :  { %v1330_v1 = vpop.f32.mrb[18].mxu1  ;;  %v1400_v58 = vpop.f32.mrb[24].mxu0 }
 0x30a   :  { %v1404_v63 = vadd.f32 %v1330_v1, %v8265_v0  ;;  %v1411_v22 = vadd.f32 %v1400_v58, %v8276_v10  ;;  %v6658_v29 = vpop.f32.mrb[19].mxu1  ;;  %v6669_v9 = vpop.f32.mrb[25].mxu0 }
 0x30c   :  { %v5995_v16 = vmul.f32 -1.442695, %v1404_v63  ;;  %v5996_v38 = vmul.f32 -1.442695, %v1411_v22 }
 0x30e   :  { %7853 = vpow2.f32 %v5995_v16 }
 0x30f   :  { %7855 = vpow2.f32 %v5996_v38 }
 0x311   :  { %v1484_v20 = vpop.f32.mrb[20].mxu1 }
 0x312   :  { %v6680_v37 = vpop.f32.mrb[21].mxu1  ;;  %v1485_v49 = vadd.f32 %v8316_v61, %v1484_v20 }
 0x318   :  { %v7854_v40 = vpop.eup %7853 }
 0x319   :  { %v1408_v5 = vadd.f32 1.0, %v7854_v40  ;;  %v7856_v11 = vpop.eup %7855 }
 0x31a   :  { %v1415_v32 = vadd.f32 1.0, %v7856_v11 }
 0x31b   :  { %7857 = vrcp.f32 %v1408_v5 }
 0x325   :  { %v7858_v52 = vpop.eup %7857 }
 0x326   :  { %v1488_v55 = vmul.f32 %v7858_v52, %v1485_v49 }
 0x328   :  { %v1489_v0 = vadd.f32 %v1488_v55, %v8291_v28 }
 0x32a   :  { %7859 = vtanh.f32 %v1489_v0 }
 0x32b   :  { %7861 = vrcp.f32 %v1415_v32  ;;  %v9048_v32 = vmov 0.0  }
 0x334   :  { %v7860_v10 = vpop.eup %7859 }
 0x335   :  { %v1491_v1 = vsub.f32 %v8333_v7, %v7860_v10  ;;  %v7862_v58 = vpop.eup %7861 }
 0x337   :  { %v1492_v63 = vmul.f32 %v7862_v58, %v1491_v1 }
 0x339   :  { %v8455_v22 = vadd.f32 %v7860_v10, %v1492_v63 }
 0x33b   :  { %6690 = vmatmul.mubr.msk.f32.vlgmr.msra.gmra.mrb[16].mxu1 %vm412_vm2, %v8455_v22  ;;  %6701 = vmatmul.mubr.msk.f32.vlgmr.msra.gmra.mrb[22].mxu0 %vm412_vm2, %v8455_v22 }
 0x33c   :  { %7440 = vmatpush3.bf16.msra.mxu0 %v8236_v54  ;;  %7446 = vmatpush3.bf16.msra.mxu1 %v8341_v14 }
 0x33d   :  { %7441 = vmatprep.subr.bf16.mxu0 %v8002_v19  ;;  %7447 = vmatprep.subr.bf16.mxu1 %v8002_v19 }
 0x33e   :  { %6711 = vmatprep.mubr.msk.f32.mxu0 %vm8003_vm1, %v9048_v32  ;;  %6722 = vmatprep.mubr.msk.f32.mxu1 %vm8003_vm1, %v9048_v32 }
 0x340   :  { %7443 = vmatpush3.bf16.msra.mxu0 %v8256_v60  ;;  %7449 = vmatpush3.bf16.msra.mxu1 %v8360_v27 }
 0x341   :  { %7450 = vmatprep.subr.bf16.mxu0 %v8002_v19  ;;  %7456 = vmatprep.subr.bf16.mxu1 %v8002_v19 }
 0x343   :  { %6712 = vmatmul.mubr.msk.f32.vlgmr.msra.gmra.mrb[26].mxu0 %vm412_vm2, %v8455_v22  ;;  %6723 = vmatmul.mubr.msk.f32.vlgmr.msra.gmra.mrb[22].mxu1 %vm412_vm2, %v8408_v62 }
 0x344   :  { %7452 = vmatpush3.bf16.msra.mxu0 %v8082_v18  ;;  %7458 = vmatpush3.bf16.msra.mxu1 %v8144_v33 }
 0x345   :  { %7453 = vmatprep.subr.bf16.mxu0 %v8002_v19  ;;  %7459 = vmatprep.subr.bf16.mxu1 %v8002_v19 }
 0x346   :  { %6733 = vmatprep.mubr.msk.f32.mxu0 %vm8003_vm1, %v9048_v32  ;;  %6744 = vmatprep.mubr.msk.f32.mxu1 %vm8003_vm1, %v9048_v32 }
 0x348   :  { %7455 = vmatpush3.bf16.msra.mxu0 %v8106_v25  ;;  %7461 = vmatpush3.bf16.msra.mxu1 %v8159_v36 }
 0x349   :  { %7462 = vmatprep.subr.bf16.mxu0 %v8002_v19  ;;  %7468 = vmatprep.subr.bf16.mxu1 %v8002_v19 }
 0x40e   :  { %v1563_v28 = vpop.f32.mrb[16].mxu1  ;;  %v1633_v7 = vpop.f32.mrb[22].mxu0 }
 0x40f   :  { %v1564_v29 = vadd.f32 %v8387_v34, %v1563_v28  ;;  %v6691_v9 = vpop.f32.mrb[17].mxu1  ;;  %v6702_v16 = vpop.f32.mrb[23].mxu0  ;;  %v1634_v40 = vadd.f32 %v8393_v43, %v1633_v7 }
 0x411   :  { %v6001_v20 = vmul.f32 -1.442695, %v1564_v29  ;;  %v6002_v49 = vmul.f32 -1.442695, %v1634_v40 }
 0x413   :  { %7863 = vpow2.f32 %v6001_v20 }
 0x414   :  { %7865 = vpow2.f32 %v6002_v49 }
 0x416   :  { %v1703_v37 = vpop.f32.mrb[26].mxu0  ;;  %v1787_v38 = vpop.f32.mrb[22].mxu1 }
 0x417   :  { %v6713_v5 = vpop.f32.mrb[27].mxu0  ;;  %v6724_v11 = vpop.f32.mrb[23].mxu1  ;;  %v1788_v10 = vadd.f32 %v8399_v3, %v1787_v38  ;;  %v1704_v58 = vadd.f32 %v8405_v13, %v1703_v37 }
 0x41d   :  { %v7864_v52 = vpop.eup %7863 }
 0x41e   :  { %v1711_v55 = vadd.f32 1.0, %v7864_v52  ;;  %v7866_v0 = vpop.eup %7865 }
 0x41f   :  { %v1718_v28 = vadd.f32 1.0, %v7866_v0 }
 0x420   :  { %7867 = vrcp.f32 %v1711_v55 }
 0x42a   :  { %v7868_v1 = vpop.eup %7867 }
 0x42b   :  { %v1791_v63 = vmul.f32 %v7868_v1, %v1788_v10 }
 0x42d   :  { %v1792_v29 = vadd.f32 %v1791_v63, %v1704_v58 }
 0x42f   :  { %7869 = vtanh.f32 %v1792_v29 }
 0x430   :  { %7871 = vrcp.f32 %v1718_v28 }
 0x439   :  { %v7870_v9 = vpop.eup %7869 }
 0x43a   :  { %v1794_v7 = vsub.f32 %v8408_v62, %v7870_v9  ;;  %v7872_v16 = vpop.eup %7871 }
 0x43c   :  { %v1795_v20 = vmul.f32 %v7872_v16, %v1794_v7 }
 0x43e   :  { %v8494_v40 = vadd.f32 %v7870_v9, %v1795_v20 }
 0x440   :  { %6734 = vmatmul.mubr.msk.f32.vlgmr.msra.gmra.mrb[28].mxu0 %vm412_vm2, %v8494_v40  ;;  %6745 = vmatmul.mubr.msk.f32.vlgmr.msra.gmra.mrb[24].mxu1 %vm412_vm2, %v8494_v40 }
 0x441   :  { %7464 = vmatpush3.bf16.msra.mxu0 %v8113_v26  ;;  %7470 = vmatpush3.bf16.msra.mxu1 %v8181_v41 }
 0x442   :  { %7465 = vmatprep.subr.bf16.mxu0 %v8002_v19  ;;  %7471 = vmatprep.subr.bf16.mxu1 %v8002_v19 }
 0x443   :  { %6755 = vmatprep.mubr.msk.f32.mxu0 %vm8003_vm1, %v9048_v32  ;;  %6766 = vmatprep.mubr.msk.f32.mxu1 %vm8003_vm1, %v9048_v32 }
 0x445   :  { %7467 = vmatpush3.bf16.msra.mxu0 %v8136_v31  ;;  %7473 = vmatpush3.bf16.msra.mxu1 %v8201_v47 }
 0x446   :  { %7474 = vmatprep.subr.bf16.mxu0 %v8002_v19  ;;  %7486 = vmatprep.subr.bf16.mxu1 %v8002_v19 }
 0x448   :  { %6756 = vmatmul.mubr.msk.f32.vlgmr.msra.gmra.mrb[30].mxu0 %vm412_vm2, %v8455_v22  ;;  %6767 = vmatmul.mubr.msk.f32.vlgmr.msra.gmra.mrb[26].mxu1 %vm412_vm2, %v8455_v22 }
 0x449   :  { %7476 = vmatpush3.bf16.msra.mxu0 %v8190_v44  ;;  %6777 = vmatprep.mubr.msk.f32.mxu0 %vm8003_vm1, %v9048_v32 }
 0x44a   :  { %7477 = vmatprep.subr.bf16.mxu0 %v8002_v19  ;;  %7488 = vmatpush3.bf16.msra.mxu1 %v8331_v6 }
 0x44b   :  { %7489 = vmatprep.subr.bf16.mxu1 %v8002_v19  ;;  %6799 = vmatprep.mubr.msk.f32.mxu1 %vm8003_vm1, %v9048_v32 }
 0x44d   :  { %7479 = vmatpush3.bf16.msra.mxu0 %v8207_v48 }
 0x44e   :  { %7480 = vmatprep.subr.bf16.mxu0 %v8002_v19  ;;  %7491 = vmatpush3.bf16.msra.mxu1 %v8354_v24 }
 0x44f   :  { %7492 = vmatprep.subr.bf16.mxu1 %v8002_v19 }
 0x450   :  { %6778 = vmatmul.mubr.msk.f32.vlgmr.msra.gmra.mrb[32].mxu0 %vm412_vm2, %v8455_v22 }
 0x451   :  { %7482 = vmatpush3.bf16.msra.mxu0 %v8228_v51  ;;  %6788 = vmatprep.mubr.msk.f32.mxu0 %vm8003_vm1, %v9048_v32 }
 0x452   :  { %7483 = vmatprep.subr.bf16.mxu0 %v8002_v19 }
 0x455   :  { %7485 = vmatpush3.bf16.msra.mxu0 %v8247_v57 }
 0x456   :  { %7498 = vmatprep.subr.bf16.mxu0 %v8002_v19 }
 0x51b   :  { %v2006_v62 = vpop.f32.mrb[30].mxu0  ;;  %v2076_v37 = vpop.f32.mrb[26].mxu1 }
 0x51c   :  { %v2080_v38 = vadd.f32 %v2006_v62, %v8278_v12  ;;  %v2087_v5 = vadd.f32 %v2076_v37, %v8289_v23  ;;  %v6757_v11 = vpop.f32.mrb[31].mxu0  ;;  %v6768_v49 = vpop.f32.mrb[27].mxu1 }
 0x51e   :  { %v6008_v52 = vmul.f32 -1.442695, %v2080_v38  ;;  %v6009_v10 = vmul.f32 -1.442695, %v2087_v5 }
 0x520   :  { %7873 = vpow2.f32 %v6008_v52 }
 0x521   :  { %7875 = vpow2.f32 %v6009_v10 }
 0x523   :  { %v2160_v55 = vpop.f32.mrb[32].mxu0 }
 0x524   :  { %v6779_v0 = vpop.f32.mrb[33].mxu0  ;;  %v2161_v28 = vadd.f32 %v8316_v61, %v2160_v55 }
 0x52a   :  { %v7874_v1 = vpop.eup %7873 }
 0x52b   :  { %v2084_v58 = vadd.f32 1.0, %v7874_v1  ;;  %v7876_v63 = vpop.eup %7875 }
 0x52c   :  { %v2091_v7 = vadd.f32 1.0, %v7876_v63 }
 0x52d   :  { %7877 = vrcp.f32 %v2084_v58 }
 0x537   :  { %v7878_v29 = vpop.eup %7877 }
 0x538   :  { %v2164_v9 = vmul.f32 %v7878_v29, %v2161_v28 }
 0x53a   :  { %v2165_v12 = vadd.f32 %v2164_v9, %v8301_v45 }
 0x53c   :  { %7879 = vtanh.f32 %v2165_v12 }
 0x53d   :  { %7881 = vrcp.f32 %v2091_v7 }
 0x546   :  { %v7880_v23 = vpop.eup %7879 }
 0x547   :  { %v2167_v16 = vsub.f32 %v8455_v22, %v7880_v23  ;;  %v7882_v20 = vpop.eup %7881 }
 0x549   :  { %v2168_v62 = vmul.f32 %v7882_v20, %v2167_v16 }
 0x54b   :  { %v8541_v37 = vadd.f32 %v7880_v23, %v2168_v62 }
 0x54d   :  { %6789 = vmatmul.mubr.msk.f32.vlgmr.msra.gmra.mrb[28].mxu0 %vm412_vm2, %v8541_v37  ;;  %6800 = vmatmul.mubr.msk.f32.vlgmr.msra.gmra.mrb[24].mxu1 %vm412_vm2, %v8541_v37 }
 0x54e   :  { %7494 = vmatpush3.bf16.msra.mxu1 %v8236_v54  ;;  %7500 = vmatpush3.bf16.msra.mxu0 %v8341_v14 }
 0x54f   :  { %7495 = vmatprep.subr.bf16.mxu1 %v8002_v19  ;;  %7501 = vmatprep.subr.bf16.mxu0 %v8002_v19 }
 0x550   :  { %6810 = vmatprep.mubr.msk.f32.mxu1 %vm8003_vm1, %v9048_v32  ;;  %6821 = vmatprep.mubr.msk.f32.mxu0 %vm8003_vm1, %v9048_v32 }
 0x552   :  { %7497 = vmatpush3.bf16.msra.mxu1 %v8256_v60  ;;  %7503 = vmatpush3.bf16.msra.mxu0 %v8360_v27 }
 0x553   :  { %7504 = vmatprep.subr.bf16.mxu1 %v8002_v19  ;;  %7510 = vmatprep.subr.bf16.mxu0 %v8002_v19 }
 0x555   :  { %6811 = vmatmul.mubr.msk.f32.vlgmr.msra.gmra.mrb[28].mxu1 %vm412_vm2, %v8541_v37  ;;  %6822 = vmatmul.mubr.msk.f32.vlgmr.msra.gmra.mrb[34].mxu0 %vm412_vm2, %v8494_v40 }
 0x556   :  { %7506 = vmatpush3.bf16.msra.mxu1 %v8082_v18  ;;  %7512 = vmatpush3.bf16.msra.mxu0 %v8144_v33 }
 0x557   :  { %7507 = vmatprep.subr.bf16.mxu1 %v8002_v19  ;;  %7513 = vmatprep.subr.bf16.mxu0 %v8002_v19 }
 0x558   :  { %6832 = vmatprep.mubr.msk.f32.mxu1 %vm8003_vm1, %v9048_v32  ;;  %6843 = vmatprep.mubr.msk.f32.mxu0 %vm8003_vm1, %v9048_v32 }
 0x55a   :  { %7509 = vmatpush3.bf16.msra.mxu1 %v8106_v25  ;;  %7515 = vmatpush3.bf16.msra.mxu0 %v8159_v36 }
 0x55b   :  { %7516 = vmatprep.subr.bf16.mxu1 %v8002_v19  ;;  %7522 = vmatprep.subr.bf16.mxu0 %v8002_v19 }
 0x620   :  { %v2239_v45 = vpop.f32.mrb[28].mxu0  ;;  %v2309_v22 = vpop.f32.mrb[24].mxu1 }
 0x621   :  { %v2240_v38 = vadd.f32 %v8387_v34, %v2239_v45  ;;  %v6790_v5 = vpop.f32.mrb[29].mxu0  ;;  %v6801_v11 = vpop.f32.mrb[25].mxu1  ;;  %v2310_v0 = vadd.f32 %v8393_v43, %v2309_v22 }
 0x623   :  { %v6014_v49 = vmul.f32 -1.442695, %v2240_v38  ;;  %v6015_v58 = vmul.f32 -1.442695, %v2310_v0 }
 0x625   :  { %7883 = vpow2.f32 %v6014_v49 }
 0x626   :  { %7885 = vpow2.f32 %v6015_v58 }
 0x628   :  { %v2379_v52 = vpop.f32.mrb[28].mxu1  ;;  %v2463_v55 = vpop.f32.mrb[34].mxu0 }
 0x629   :  { %v6812_v10 = vpop.f32.mrb[29].mxu1  ;;  %v6823_v1 = vpop.f32.mrb[35].mxu0  ;;  %v2464_v9 = vadd.f32 %v8399_v3, %v2463_v55  ;;  %v2380_v12 = vadd.f32 %v8405_v13, %v2379_v52 }
 0x62f   :  { %v7884_v63 = vpop.eup %7883 }
 0x630   :  { %v2387_v28 = vadd.f32 1.0, %v7884_v63  ;;  %v7886_v29 = vpop.eup %7885 }
 0x631   :  { %v2394_v16 = vadd.f32 1.0, %v7886_v29 }
 0x632   :  { %7887 = vrcp.f32 %v2387_v28 }
 0x63c   :  { %v7888_v7 = vpop.eup %7887 }
 0x63d   :  { %v2467_v23 = vmul.f32 %v7888_v7, %v2464_v9 }
 0x63f   :  { %v2468_v20 = vadd.f32 %v2467_v23, %v2380_v12 }
 0x641   :  { %7889 = vtanh.f32 %v2468_v20 }
 0x642   :  { %7891 = vrcp.f32 %v2394_v16 }
 0x64b   :  { %v7890_v62 = vpop.eup %7889 }
 0x64c   :  { %v2470_v45 = vsub.f32 %v8494_v40, %v7890_v62  ;;  %v7892_v22 = vpop.eup %7891 }
 0x64e   :  { %v2471_v38 = vmul.f32 %v7892_v22, %v2470_v45 }
 0x650   :  { %v8580_v5 = vadd.f32 %v7890_v62, %v2471_v38 }
 0x652   :  { %6833 = vmatmul.mubr.msk.f32.vlgmr.msra.gmra.mrb[30].mxu1 %vm412_vm2, %v8580_v5  ;;  %6844 = vmatmul.mubr.msk.f32.vlgmr.msra.gmra.mrb[36].mxu0 %vm412_vm2, %v8580_v5 }
 0x653   :  { %7518 = vmatpush3.bf16.msra.mxu1 %v8113_v26  ;;  %7524 = vmatpush3.bf16.msra.mxu0 %v8181_v41 }
 0x654   :  { %7519 = vmatprep.subr.bf16.mxu1 %v8002_v19  ;;  %7525 = vmatprep.subr.bf16.mxu0 %v8002_v19 }
 0x655   :  { %6854 = vmatprep.mubr.msk.f32.mxu1 %vm8003_vm1, %v9048_v32  ;;  %6865 = vmatprep.mubr.msk.f32.mxu0 %vm8003_vm1, %v9048_v32 }
 0x657   :  { %7521 = vmatpush3.bf16.msra.mxu1 %v8136_v31  ;;  %7527 = vmatpush3.bf16.msra.mxu0 %v8201_v47 }
 0x658   :  { %7528 = vmatprep.subr.bf16.mxu1 %v8002_v19  ;;  %7540 = vmatprep.subr.bf16.mxu0 %v8002_v19 }
 0x65a   :  { %6855 = vmatmul.mubr.msk.f32.vlgmr.msra.gmra.mrb[32].mxu1 %vm412_vm2, %v8541_v37  ;;  %6866 = vmatmul.mubr.msk.f32.vlgmr.msra.gmra.mrb[38].mxu0 %vm412_vm2, %v8541_v37 }
 0x65b   :  { %7530 = vmatpush3.bf16.msra.mxu1 %v8190_v44  ;;  %6876 = vmatprep.mubr.msk.f32.mxu1 %vm8003_vm1, %v9048_v32 }
 0x65c   :  { %7531 = vmatprep.subr.bf16.mxu1 %v8002_v19  ;;  %7542 = vmatpush3.bf16.msra.mxu0 %v8331_v6 }
 0x65d   :  { %7543 = vmatprep.subr.bf16.mxu0 %v8002_v19  ;;  %6898 = vmatprep.mubr.msk.f32.mxu0 %vm8003_vm1, %v9048_v32 }
 0x65f   :  { %7533 = vmatpush3.bf16.msra.mxu1 %v8207_v48 }
 0x660   :  { %7534 = vmatprep.subr.bf16.mxu1 %v8002_v19  ;;  %7545 = vmatpush3.bf16.msra.mxu0 %v8354_v24 }
 0x661   :  { %7546 = vmatprep.subr.bf16.mxu0 %v8002_v19 }
 0x662   :  { %6877 = vmatmul.mubr.msk.f32.vlgmr.msra.gmra.mrb[34].mxu1 %vm412_vm2, %v8541_v37 }
 0x663   :  { %7536 = vmatpush3.bf16.msra.mxu1 %v8228_v51  ;;  %6887 = vmatprep.mubr.msk.f32.mxu1 %vm8003_vm1, %v9048_v32 }
 0x664   :  { %7537 = vmatprep.subr.bf16.mxu1 %v8002_v19 }
 0x667   :  { %7539 = vmatpush3.bf16.msra.mxu1 %v8247_v57 }
 0x668   :  { %7552 = vmatprep.subr.bf16.mxu1 %v8002_v19 }
 0x72d   :  { %v2682_v40 = vpop.f32.mrb[32].mxu1  ;;  %v2752_v11 = vpop.f32.mrb[38].mxu0 }
 0x72e   :  { %v2756_v49 = vadd.f32 %v2682_v40, %v8274_v8  ;;  %v2763_v52 = vadd.f32 %v2752_v11, %v8282_v17  ;;  %v6856_v55 = vpop.f32.mrb[33].mxu1  ;;  %v6867_v0 = vpop.f32.mrb[39].mxu0 }
 0x730   :  { %v6021_v10 = vmul.f32 -1.442695, %v2756_v49  ;;  %v6022_v63 = vmul.f32 -1.442695, %v2763_v52 }
 0x732   :  { %7893 = vpow2.f32 %v6021_v10 }
 0x733   :  { %7895 = vpow2.f32 %v6022_v63 }
 0x735   :  { %v2836_v1 = vpop.f32.mrb[34].mxu1 }
 0x736   :  { %v6878_v58 = vpop.f32.mrb[35].mxu1  ;;  %v2837_v7 = vadd.f32 %v8316_v61, %v2836_v1 }
 0x73c   :  { %v7894_v28 = vpop.eup %7893 }
 0x73d   :  { %v2760_v29 = vadd.f32 1.0, %v7894_v28  ;;  %v7896_v9 = vpop.eup %7895 }
 0x73e   :  { %v2767_v16 = vadd.f32 1.0, %v7896_v9 }
 0x73f   :  { %7897 = vrcp.f32 %v2760_v29 }
 0x749   :  { %v7898_v12 = vpop.eup %7897 }
 0x74a   :  { %v2840_v23 = vmul.f32 %v7898_v12, %v2837_v7 }
 0x74c   :  { %v2841_v8 = vadd.f32 %v2840_v23, %v8297_v39 }
 0x74e   :  { %7899 = vtanh.f32 %v2841_v8 }
 0x74f   :  { %7901 = vrcp.f32 %v2767_v16 }
 0x758   :  { %v7900_v17 = vpop.eup %7899 }
 0x759   :  { %v2843_v20 = vsub.f32 %v8541_v37, %v7900_v17  ;;  %v7902_v62 = vpop.eup %7901 }
 0x75b   :  { %v2844_v45 = vmul.f32 %v7902_v62, %v2843_v20 }
 0x75d   :  { %v8627_v22 = vadd.f32 %v7900_v17, %v2844_v45 }
 0x75f   :  { %6888 = vmatmul.mubr.msk.f32.vlgmr.msra.gmra.mrb[30].mxu1 %vm412_vm2, %v8627_v22  ;;  %6899 = vmatmul.mubr.msk.f32.vlgmr.msra.gmra.mrb[36].mxu0 %vm412_vm2, %v8627_v22 }
 0x760   :  { %7548 = vmatpush3.bf16.msra.mxu0 %v8236_v54  ;;  %7554 = vmatpush3.bf16.msra.mxu1 %v8341_v14 }
 0x761   :  { %7549 = vmatprep.subr.bf16.mxu0 %v8002_v19  ;;  %7555 = vmatprep.subr.bf16.mxu1 %v8002_v19 }
 0x762   :  { %6909 = vmatprep.mubr.msk.f32.mxu0 %vm8003_vm1, %v9048_v32  ;;  %6920 = vmatprep.mubr.msk.f32.mxu1 %vm8003_vm1, %v9048_v32 }
 0x764   :  { %7551 = vmatpush3.bf16.msra.mxu0 %v8256_v60  ;;  %7557 = vmatpush3.bf16.msra.mxu1 %v8360_v27 }
 0x765   :  { %7558 = vmatprep.subr.bf16.mxu0 %v8002_v19  ;;  %7564 = vmatprep.subr.bf16.mxu1 %v8002_v19 }
 0x767   :  { %6910 = vmatmul.mubr.msk.f32.vlgmr.msra.gmra.mrb[40].mxu0 %vm412_vm2, %v8627_v22  ;;  %6921 = vmatmul.mubr.msk.f32.vlgmr.msra.gmra.mrb[36].mxu1 %vm412_vm2, %v8580_v5 }
 0x768   :  { %7560 = vmatpush3.bf16.msra.mxu0 %v8082_v18  ;;  %7566 = vmatpush3.bf16.msra.mxu1 %v8144_v33 }
 0x769   :  { %7561 = vmatprep.subr.bf16.mxu0 %v8002_v19  ;;  %7567 = vmatprep.subr.bf16.mxu1 %v8002_v19 }
 0x76a   :  { %6931 = vmatprep.mubr.msk.f32.mxu0 %vm8003_vm1, %v9048_v32  ;;  %6942 = vmatprep.mubr.msk.f32.mxu1 %vm8003_vm1, %v9048_v32 }
 0x76c   :  { %7563 = vmatpush3.bf16.msra.mxu0 %v8106_v25  ;;  %7569 = vmatpush3.bf16.msra.mxu1 %v8159_v36 }
 0x76d   :  { %7570 = vmatprep.subr.bf16.mxu0 %v8002_v19  ;;  %7576 = vmatprep.subr.bf16.mxu1 %v8002_v19 }
 0x832   :  { %v2915_v39 = vpop.f32.mrb[30].mxu1  ;;  %v2985_v37 = vpop.f32.mrb[36].mxu0 }
 0x833   :  { %v2916_v38 = vadd.f32 %v8387_v34, %v2915_v39  ;;  %v6889_v40 = vpop.f32.mrb[31].mxu1  ;;  %v6900_v11 = vpop.f32.mrb[37].mxu0  ;;  %v2986_v0 = vadd.f32 %v8393_v43, %v2985_v37 }
 0x835   :  { %v6027_v49 = vmul.f32 -1.442695, %v2916_v38  ;;  %v6028_v58 = vmul.f32 -1.442695, %v2986_v0 }
 0x837   :  { %7903 = vpow2.f32 %v6027_v49 }
 0x838   :  { %7905 = vpow2.f32 %v6028_v58 }
 0x83a   :  { %v3055_v52 = vpop.f32.mrb[40].mxu0  ;;  %v3139_v55 = vpop.f32.mrb[36].mxu1 }
 0x83b   :  { %v6911_v10 = vpop.f32.mrb[41].mxu0  ;;  %v6922_v1 = vpop.f32.mrb[37].mxu1  ;;  %v3140_v9 = vadd.f32 %v8399_v3, %v3139_v55  ;;  %v3056_v12 = vadd.f32 %v8405_v13, %v3055_v52 }
 0x841   :  { %v7904_v63 = vpop.eup %7903 }
 0x842   :  { %v3063_v28 = vadd.f32 1.0, %v7904_v63  ;;  %v7906_v29 = vpop.eup %7905 }
 0x843   :  { %v3070_v16 = vadd.f32 1.0, %v7906_v29 }
 0x844   :  { %7907 = vrcp.f32 %v3063_v28 }
 0x84e   :  { %v7908_v7 = vpop.eup %7907 }
 0x84f   :  { %v3143_v23 = vmul.f32 %v7908_v7, %v3140_v9 }
 0x851   :  { %v3144_v8 = vadd.f32 %v3143_v23, %v3056_v12 }
 0x853   :  { %7909 = vtanh.f32 %v3144_v8 }
 0x854   :  { %7911 = vrcp.f32 %v3070_v16 }
 0x85d   :  { %v7910_v17 = vpop.eup %7909 }
 0x85e   :  { %v3146_v20 = vsub.f32 %v8580_v5, %v7910_v17  ;;  %v7912_v62 = vpop.eup %7911 }
 0x860   :  { %v3147_v45 = vmul.f32 %v7912_v62, %v3146_v20 }
 0x862   :  { %v8666_v39 = vadd.f32 %v7910_v17, %v3147_v45 }
 0x864   :  { %6932 = vmatmul.mubr.msk.f32.vlgmr.msra.gmra.mrb[42].mxu0 %vm412_vm2, %v8666_v39  ;;  %6943 = vmatmul.mubr.msk.f32.vlgmr.msra.gmra.mrb[38].mxu1 %vm412_vm2, %v8666_v39 }
 0x865   :  { %7572 = vmatpush3.bf16.msra.mxu0 %v8113_v26  ;;  %7578 = vmatpush3.bf16.msra.mxu1 %v8181_v41 }
 0x866   :  { %7573 = vmatprep.subr.bf16.mxu0 %v8002_v19  ;;  %7579 = vmatprep.subr.bf16.mxu1 %v8002_v19 }
 0x867   :  { %6953 = vmatprep.mubr.msk.f32.mxu0 %vm8003_vm1, %v9048_v32  ;;  %6964 = vmatprep.mubr.msk.f32.mxu1 %vm8003_vm1, %v9048_v32 }
 0x869   :  { %7575 = vmatpush3.bf16.msra.mxu0 %v8136_v31  ;;  %7581 = vmatpush3.bf16.msra.mxu1 %v8201_v47 }
 0x86a   :  { %7582 = vmatprep.subr.bf16.mxu0 %v8002_v19  ;;  %7594 = vmatprep.subr.bf16.mxu1 %v8002_v19 }
 0x86c   :  { %6954 = vmatmul.mubr.msk.f32.vlgmr.msra.gmra.mrb[44].mxu0 %vm412_vm2, %v8627_v22  ;;  %6965 = vmatmul.mubr.msk.f32.vlgmr.msra.gmra.mrb[40].mxu1 %vm412_vm2, %v8627_v22 }
 0x86d   :  { %7584 = vmatpush3.bf16.msra.mxu0 %v8190_v44  ;;  %6975 = vmatprep.mubr.msk.f32.mxu0 %vm8003_vm1, %v9048_v32 }
 0x86e   :  { %7585 = vmatprep.subr.bf16.mxu0 %v8002_v19  ;;  %7596 = vmatpush3.bf16.msra.mxu1 %v8331_v6 }
 0x86f   :  { %7597 = vmatprep.subr.bf16.mxu1 %v8002_v19  ;;  %6997 = vmatprep.mubr.msk.f32.mxu1 %vm8003_vm1, %v9048_v32 }
 0x871   :  { %7587 = vmatpush3.bf16.msra.mxu0 %v8207_v48 }
 0x872   :  { %7588 = vmatprep.subr.bf16.mxu0 %v8002_v19  ;;  %7599 = vmatpush3.bf16.msra.mxu1 %v8354_v24 }
 0x873   :  { %7600 = vmatprep.subr.bf16.mxu1 %v8002_v19 }
 0x874   :  { %6976 = vmatmul.mubr.msk.f32.vlgmr.msra.gmra.mrb[46].mxu0 %vm412_vm2, %v8627_v22 }
 0x875   :  { %7590 = vmatpush3.bf16.msra.mxu0 %v8228_v51  ;;  %6986 = vmatprep.mubr.msk.f32.mxu0 %vm8003_vm1, %v9048_v32 }
 0x876   :  { %7591 = vmatprep.subr.bf16.mxu0 %v8002_v19 }
 0x879   :  { %7593 = vmatpush3.bf16.msra.mxu0 %v8247_v57 }
 0x87a   :  { %7606 = vmatprep.subr.bf16.mxu0 %v8002_v19 }
 0x93f   :  { %v3358_v5 = vpop.f32.mrb[44].mxu0  ;;  %v3428_v37 = vpop.f32.mrb[40].mxu1 }
 0x940   :  { %v3432_v38 = vadd.f32 %v3358_v5, %v8284_v21  ;;  %v3439_v40 = vadd.f32 %v3428_v37, %v8295_v35  ;;  %v6955_v11 = vpop.f32.mrb[45].mxu0  ;;  %v6966_v49 = vpop.f32.mrb[41].mxu1 }
 0x942   :  { %v6034_v52 = vmul.f32 -1.442695, %v3432_v38  ;;  %v6035_v10 = vmul.f32 -1.442695, %v3439_v40 }
 0x944   :  { %7913 = vpow2.f32 %v6034_v52 }
 0x945   :  { %7915 = vpow2.f32 %v6035_v10 }
 0x947   :  { %v3512_v55 = vpop.f32.mrb[46].mxu0 }
 0x948   :  { %v6977_v0 = vpop.f32.mrb[47].mxu0  ;;  %v3513_v28 = vadd.f32 %v8316_v61, %v3512_v55 }
 0x94e   :  { %v7914_v1 = vpop.eup %7913 }
 0x94f   :  { %v3436_v58 = vadd.f32 1.0, %v7914_v1  ;;  %v7916_v63 = vpop.eup %7915 }
 0x950   :  { %v3443_v7 = vadd.f32 1.0, %v7916_v63 }
 0x951   :  { %7917 = vrcp.f32 %v3436_v58 }
 0x95b   :  { %v7918_v29 = vpop.eup %7917 }
 0x95c   :  { %v3516_v9 = vmul.f32 %v7918_v29, %v3513_v28 }
 0x95e   :  { %v3517_v21 = vadd.f32 %v3516_v9, %v8307_v53 }
 0x960   :  { %7919 = vtanh.f32 %v3517_v21 }
 0x961   :  { %7921 = vrcp.f32 %v3443_v7 }
 0x96a   :  { %v7920_v35 = vpop.eup %7919 }
 0x96b   :  { %v3519_v12 = vsub.f32 %v8627_v22, %v7920_v35  ;;  %v7922_v23 = vpop.eup %7921 }
 0x96d   :  { %v3520_v16 = vmul.f32 %v7922_v23, %v3519_v12 }
 0x96f   :  { %v8713_v8 = vadd.f32 %v7920_v35, %v3520_v16 }
 0x971   :  { %6987 = vmatmul.mubr.msk.f32.vlgmr.msra.gmra.mrb[42].mxu0 %vm412_vm2, %v8713_v8  ;;  %6998 = vmatmul.mubr.msk.f32.vlgmr.msra.gmra.mrb[38].mxu1 %vm412_vm2, %v8713_v8 }
 0x972   :  { %7602 = vmatpush3.bf16.msra.mxu1 %v8236_v54  ;;  %7608 = vmatpush3.bf16.msra.mxu0 %v8341_v14 }
 0x973   :  { %7603 = vmatprep.subr.bf16.mxu1 %v8002_v19  ;;  %7609 = vmatprep.subr.bf16.mxu0 %v8002_v19 }
 0x974   :  { %7008 = vmatprep.mubr.msk.f32.mxu1 %vm8003_vm1, %v9048_v32  ;;  %7019 = vmatprep.mubr.msk.f32.mxu0 %vm8003_vm1, %v9048_v32 }
 0x976   :  { %7605 = vmatpush3.bf16.msra.mxu1 %v8256_v60  ;;  %7611 = vmatpush3.bf16.msra.mxu0 %v8360_v27 }
 0x977   :  { %7612 = vmatprep.subr.bf16.mxu1 %v8002_v19  ;;  %7618 = vmatprep.subr.bf16.mxu0 %v8002_v19 }
 0x979   :  { %7009 = vmatmul.mubr.msk.f32.vlgmr.msra.gmra.mrb[42].mxu1 %vm412_vm2, %v8713_v8  ;;  %7020 = vmatmul.mubr.msk.f32.vlgmr.msra.gmra.mrb[48].mxu0 %vm412_vm2, %v8666_v39 }
 0x97a   :  { %7614 = vmatpush3.bf16.msra.mxu1 %v8082_v18  ;;  %7620 = vmatpush3.bf16.msra.mxu0 %v8144_v33 }
 0x97b   :  { %7615 = vmatprep.subr.bf16.mxu1 %v8002_v19  ;;  %7621 = vmatprep.subr.bf16.mxu0 %v8002_v19 }
 0x97c   :  { %7030 = vmatprep.mubr.msk.f32.mxu1 %vm8003_vm1, %v9048_v32  ;;  %7041 = vmatprep.mubr.msk.f32.mxu0 %vm8003_vm1, %v9048_v32 }
 0x97e   :  { %7617 = vmatpush3.bf16.msra.mxu1 %v8106_v25  ;;  %7623 = vmatpush3.bf16.msra.mxu0 %v8159_v36 }
 0x97f   :  { %7624 = vmatprep.subr.bf16.mxu1 %v8002_v19  ;;  %7630 = vmatprep.subr.bf16.mxu0 %v8002_v19 }
 0xa44   :  { %v3591_v53 = vpop.f32.mrb[42].mxu0  ;;  %v3661_v61 = vpop.f32.mrb[38].mxu1 }
 0xa45   :  { %v3592_v22 = vadd.f32 %v8387_v34, %v3591_v53  ;;  %v6988_v17 = vpop.f32.mrb[43].mxu0  ;;  %v6999_v20 = vpop.f32.mrb[39].mxu1  ;;  %v3662_v37 = vadd.f32 %v8393_v43, %v3661_v61 }
 0xa47   :  { %v6040_v62 = vmul.f32 -1.442695, %v3592_v22  ;;  %v6041_v11 = vmul.f32 -1.442695, %v3662_v37 }
 0xa49   :  { %7923 = vpow2.f32 %v6040_v62  ;;  %v8799_v62 = vld [vmem:[%s9044_s2 + $0x3] ss:$0 sm:$0xff] }
 0xa4a   :  { %7925 = vpow2.f32 %v6041_v11 }
 0xa4c   :  { %v3731_v45 = vpop.f32.mrb[42].mxu1  ;;  %v3815_v5 = vpop.f32.mrb[48].mxu0 }
 0xa4d   :  { %v7010_v38 = vpop.f32.mrb[43].mxu1  ;;  %v7021_v40 = vpop.f32.mrb[49].mxu0  ;;  %v3816_v0 = vadd.f32 %v8399_v3, %v3815_v5  ;;  %v3732_v34 = vadd.f32 %v8405_v13, %v3731_v45 }
 0xa53   :  { %v7924_v49 = vpop.eup %7923 }
 0xa54   :  { %v3739_v52 = vadd.f32 1.0, %v7924_v49  ;;  %v7926_v55 = vpop.eup %7925 }
 0xa55   :  { %v3746_v58 = vadd.f32 1.0, %v7926_v55  ;;  %v8841_v55 = vld [vmem:[%s9044_s2 + $0x4] ss:$0 sm:$0xff] }
 0xa56   :  { %7927 = vrcp.f32 %v3739_v52 }
 0xa60   :  { %v7928_v10 = vpop.eup %7927 }
 0xa61   :  { %v3819_v1 = vmul.f32 %v7928_v10, %v3816_v0 }
 0xa63   :  { %v3820_v63 = vadd.f32 %v3819_v1, %v3732_v34 }
 0xa65   :  { %7929 = vtanh.f32 %v3820_v63 }
 0xa66   :  { %7931 = vrcp.f32 %v3746_v58 }
 0xa6f   :  { %v7930_v28 = vpop.eup %7929 }
 0xa70   :  { %v3822_v43 = vsub.f32 %v8666_v39, %v7930_v28  ;;  %v7932_v29 = vpop.eup %7931 }
 0xa72   :  { %v3823_v9 = vmul.f32 %v7932_v29, %v3822_v43 }
 0xa74   :  { %v8752_v7 = vadd.f32 %v7930_v28, %v3823_v9  ;;  %v8847_v28 = vld [vmem:[%s9044_s2 + $0x5] ss:$0 sm:$0xff] }
 0xa76   :  { %7031 = vmatmul.mubr.msk.f32.vlgmr.msra.gmra.mrb[44].mxu1 %vm412_vm2, %v8752_v7  ;;  %7042 = vmatmul.mubr.msk.f32.vlgmr.msra.gmra.mrb[50].mxu0 %vm412_vm2, %v8752_v7 }
 0xa77   :  { %7626 = vmatpush3.bf16.msra.mxu1 %v8113_v26  ;;  %7632 = vmatpush3.bf16.msra.mxu0 %v8181_v41 }
 0xa78   :  { %7627 = vmatprep.subr.bf16.mxu1 %v8002_v19  ;;  %7633 = vmatprep.subr.bf16.mxu0 %v8002_v19 }
 0xa79   :  { %7052 = vmatprep.mubr.msk.f32.mxu1 %vm8003_vm1, %v9048_v32  ;;  %7063 = vmatprep.mubr.msk.f32.mxu0 %vm8003_vm1, %v9048_v32 }
 0xa7b   :  { %7629 = vmatpush3.bf16.msra.mxu1 %v8136_v31  ;;  %7635 = vmatpush3.bf16.msra.mxu0 %v8201_v47 }
 0xa7c   :  { %7636 = vmatprep.subr.bf16.mxu1 %v8002_v19  ;;  %7648 = vmatprep.subr.bf16.mxu0 %v8002_v19 }
 0xa7e   :  { %7053 = vmatmul.mubr.msk.f32.vlgmr.msra.gmra.mrb[46].mxu1 %vm412_vm2, %v8713_v8  ;;  %7064 = vmatmul.mubr.msk.f32.vlgmr.msra.gmra.mrb[52].mxu0 %vm412_vm2, %v8713_v8 }
 0xa7f   :  { %7638 = vmatpush3.bf16.msra.mxu1 %v8190_v44  ;;  %7074 = vmatprep.mubr.msk.f32.mxu1 %vm8003_vm1, %v9048_v32 }
 0xa80   :  { %7639 = vmatprep.subr.bf16.mxu1 %v8002_v19  ;;  %7650 = vmatpush3.bf16.msra.mxu0 %v8331_v6 }
 0xa81   :  { %7651 = vmatprep.subr.bf16.mxu0 %v8002_v19  ;;  %7096 = vmatprep.mubr.msk.f32.mxu0 %vm8003_vm1, %v9048_v32 }
 0xa83   :  { %7641 = vmatpush3.bf16.msra.mxu1 %v8207_v48 }
 0xa84   :  { %7642 = vmatprep.subr.bf16.mxu1 %v8002_v19  ;;  %7653 = vmatpush3.bf16.msra.mxu0 %v8354_v24 }
 0xa85   :  { %7654 = vmatprep.subr.bf16.mxu0 %v8002_v19 }
 0xa86   :  { %7075 = vmatmul.mubr.msk.f32.vlgmr.msra.gmra.mrb[48].mxu1 %vm412_vm2, %v8713_v8 }
 0xa87   :  { %7644 = vmatpush3.bf16.msra.mxu1 %v8228_v51  ;;  %7085 = vmatprep.mubr.msk.f32.mxu1 %vm8003_vm1, %v9048_v32 }
 0xa88   :  { %7645 = vmatprep.subr.bf16.mxu1 %v8002_v19 }
 0xa8b   :  { %7647 = vmatpush3.bf16.msra.mxu1 %v8247_v57 }
 0xa8c   :  { %7660 = vmatprep.subr.bf16.mxu1 %v8002_v19 }
 0xb51   :  { %v4034_v3 = vpop.f32.mrb[46].mxu1  ;;  %v4104_v13 = vpop.f32.mrb[52].mxu0 }
 0xb52   :  { %v4108_v39 = vadd.f32 %v4034_v3, %v8280_v15  ;;  %v4115_v21 = vadd.f32 %v4104_v13, %v8293_v30  ;;  %v7054_v35 = vpop.f32.mrb[47].mxu1  ;;  %v7065_v12 = vpop.f32.mrb[53].mxu0 }
 0xb53   :  { %v8853_v35 = vld [vmem:[%s9044_s2 + $0x7] ss:$0 sm:$0xff] }
 0xb54   :  { %v6047_v23 = vmul.f32 -1.442695, %v4108_v39  ;;  %v6048_v61 = vmul.f32 -1.442695, %v4115_v21 }
 0xb56   :  { %7933 = vpow2.f32 %v6047_v23 }
 0xb57   :  { %7935 = vpow2.f32 %v6048_v61 }
 0xb59   :  { %v4188_v16 = vpop.f32.mrb[48].mxu1 }
 0xb5a   :  { %v7076_v53 = vpop.f32.mrb[49].mxu1  ;;  %v4189_v15 = vadd.f32 %v8799_v62, %v4188_v16  ;;  %v8859_v16 = vld [vmem:[%s9044_s2 + $0x6] ss:$0 sm:$0xff] }
 0xb60   :  { %v7934_v22 = vpop.eup %7933 }
 0xb61   :  { %v4112_v17 = vadd.f32 1.0, %v7934_v22  ;;  %v7936_v20 = vpop.eup %7935 }
 0xb62   :  { %v4119_v5 = vadd.f32 1.0, %v7936_v20 }
 0xb63   :  { %7937 = vrcp.f32 %v4112_v17 }
 0xb6d   :  { %v7938_v30 = vpop.eup %7937 }
 0xb6e   :  { %v4192_v45 = vmul.f32 %v7938_v30, %v4189_v15 }
 0xb70   :  { %v4193_v37 = vadd.f32 %v4192_v45, %v8305_v50 }
 0xb72   :  { %7939 = vtanh.f32 %v4193_v37 }
 0xb73   :  { %7941 = vrcp.f32 %v4119_v5 }
 0xb7c   :  { %v7940_v38 = vpop.eup %7939 }
 0xb7d   :  { %v4195_v40 = vsub.f32 %v8713_v8, %v7940_v38  ;;  %v7942_v11 = vpop.eup %7941 }
 0xb7f   :  { %v4196_v49 = vmul.f32 %v7942_v11, %v4195_v40 }
 0xb81   :  { %v8804_v52 = vadd.f32 %v7940_v38, %v4196_v49 }
 0xb83   :  { %7086 = vmatmul.mubr.msk.f32.vlgmr.msra.gmra.mrb[44].mxu1 %vm412_vm2, %v8804_v52  ;;  %7097 = vmatmul.mubr.msk.f32.vlgmr.msra.gmra.mrb[50].mxu0 %vm412_vm2, %v8804_v52 }
 0xb84   :  { %7656 = vmatpush3.bf16.msra.mxu0 %v8236_v54  ;;  %7662 = vmatpush3.bf16.msra.mxu1 %v8341_v14 }
 0xb85   :  { %7657 = vmatprep.subr.bf16.mxu0 %v8002_v19  ;;  %7663 = vmatprep.subr.bf16.mxu1 %v8002_v19 }
 0xb86   :  { %7107 = vmatprep.mubr.msk.f32.mxu0 %vm8003_vm1, %v9048_v32  ;;  %7118 = vmatprep.mubr.msk.f32.mxu1 %vm8003_vm1, %v9048_v32 }
 0xb88   :  { %7659 = vmatpush3.bf16.msra.mxu0 %v8256_v60  ;;  %7665 = vmatpush3.bf16.msra.mxu1 %v8360_v27 }
 0xb89   :  { %7666 = vmatprep.subr.bf16.mxu0 %v8002_v19  ;;  %7672 = vmatprep.subr.bf16.mxu1 %v8002_v19 }
 0xb8b   :  { %7108 = vmatmul.mubr.msk.f32.vlgmr.msra.gmra.mrb[54].mxu0 %vm412_vm2, %v8804_v52  ;;  %7119 = vmatmul.mubr.msk.f32.vlgmr.msra.gmra.mrb[50].mxu1 %vm412_vm2, %v8752_v7 }
 0xb8c   :  { %7668 = vmatpush3.bf16.msra.mxu0 %v8082_v18  ;;  %7674 = vmatpush3.bf16.msra.mxu1 %v8144_v33 }
 0xb8d   :  { %7669 = vmatprep.subr.bf16.mxu0 %v8002_v19  ;;  %7675 = vmatprep.subr.bf16.mxu1 %v8002_v19 }
 0xb8e   :  { %7129 = vmatprep.mubr.msk.f32.mxu0 %vm8003_vm1, %v9048_v32  ;;  %7140 = vmatprep.mubr.msk.f32.mxu1 %vm8003_vm1, %v9048_v32 }
 0xb90   :  { %7671 = vmatpush3.bf16.msra.mxu0 %v8106_v25  ;;  %7677 = vmatpush3.bf16.msra.mxu1 %v8159_v36 }
 0xb91   :  { %7678 = vmatprep.subr.bf16.mxu0 %v8002_v19  ;;  %7684 = vmatprep.subr.bf16.mxu1 %v8002_v19 }
 0xc56   :  { %v4267_v50 = vpop.f32.mrb[44].mxu1  ;;  %v4337_v8 = vpop.f32.mrb[50].mxu0 }
 0xc57   :  { %v4268_v0 = vadd.f32 %v8841_v55, %v4267_v50  ;;  %v7087_v10 = vpop.f32.mrb[45].mxu1  ;;  %v7098_v34 = vpop.f32.mrb[51].mxu0  ;;  %v4338_v43 = vadd.f32 %v8847_v28, %v4337_v8 }
 0xc59   :  { %v6053_v1 = vmul.f32 -1.442695, %v4268_v0  ;;  %v6054_v3 = vmul.f32 -1.442695, %v4338_v43 }
 0xc5b   :  { %7943 = vpow2.f32 %v6053_v1 }
 0xc5c   :  { %7945 = vpow2.f32 %v6054_v3 }
 0xc5e   :  { %v4407_v58 = vpop.f32.mrb[54].mxu0  ;;  %v4491_v63 = vpop.f32.mrb[50].mxu1 }
 0xc5f   :  { %v7109_v29 = vpop.f32.mrb[55].mxu0  ;;  %v7120_v9 = vpop.f32.mrb[51].mxu1  ;;  %v4492_v12 = vadd.f32 %v8853_v35, %v4491_v63  ;;  %v4408_v53 = vadd.f32 %v8859_v16, %v4407_v58 }
 0xc65   :  { %v7944_v13 = vpop.eup %7943 }
 0xc66   :  { %v4415_v39 = vadd.f32 1.0, %v7944_v13  ;;  %v7946_v21 = vpop.eup %7945 }
 0xc67   :  { %v4422_v22 = vadd.f32 1.0, %v7946_v21 }
 0xc68   :  { %7947 = vrcp.f32 %v4415_v39 }
 0xc72   :  { %v7948_v23 = vpop.eup %7947 }
 0xc73   :  { %v4495_v61 = vmul.f32 %v7948_v23, %v4492_v12 }
 0xc75   :  { %v4496_v17 = vadd.f32 %v4495_v61, %v4408_v53 }
 0xc77   :  { %7949 = vtanh.f32 %v4496_v17 }
 0xc78   :  { %7951 = vrcp.f32 %v4422_v22 }
 0xc81   :  { %v7950_v20 = vpop.eup %7949 }
 0xc82   :  { %v4498_v15 = vsub.f32 %v8752_v7, %v7950_v20  ;;  %v7952_v30 = vpop.eup %7951 }
 0xc84   :  { %v4499_v45 = vmul.f32 %v7952_v30, %v4498_v15 }
 0xc86   :  { %v8863_v5 = vadd.f32 %v7950_v20, %v4499_v45 }
 0xc88   :  { %7130 = vmatmul.mubr.msk.f32.vlgmr.msra.gmra.mrb[56].mxu0 %vm412_vm2, %v8863_v5  ;;  %7141 = vmatmul.mubr.msk.f32.vlgmr.msra.gmra.mrb[52].mxu1 %vm412_vm2, %v8863_v5 }
 0xc89   :  { %7680 = vmatpush3.bf16.msra.mxu0 %v8113_v26  ;;  %7686 = vmatpush3.bf16.msra.mxu1 %v8181_v41 }
 0xc8a   :  { %7681 = vmatprep.subr.bf16.mxu0 %v8002_v19  ;;  %7687 = vmatprep.subr.bf16.mxu1 %v8002_v19 }
 0xc8b   :  { %7151 = vmatprep.mubr.msk.f32.mxu0 %vm8003_vm1, %v9048_v32  ;;  %7162 = vmatprep.mubr.msk.f32.mxu1 %vm8003_vm1, %v9048_v32 }
 0xc8d   :  { %7683 = vmatpush3.bf16.msra.mxu0 %v8136_v31  ;;  %7689 = vmatpush3.bf16.msra.mxu1 %v8201_v47 }
 0xc8e   :  { %7690 = vmatprep.subr.bf16.mxu0 %v8002_v19  ;;  %7702 = vmatprep.subr.bf16.mxu1 %v8002_v19 }
 0xc90   :  { %7152 = vmatmul.mubr.msk.f32.vlgmr.msra.gmra.mrb[58].mxu0 %vm412_vm2, %v8804_v52  ;;  %7163 = vmatmul.mubr.msk.f32.vlgmr.msra.gmra.mrb[54].mxu1 %vm412_vm2, %v8804_v52 }
 0xc91   :  { %7692 = vmatpush3.bf16.msra.mxu0 %v8190_v44  ;;  %7173 = vmatprep.mubr.msk.f32.mxu0 %vm8003_vm1, %v9048_v32 }
 0xc92   :  { %7693 = vmatprep.subr.bf16.mxu0 %v8002_v19  ;;  %7704 = vmatpush3.bf16.msra.mxu1 %v8331_v6 }
 0xc93   :  { %7705 = vmatprep.subr.bf16.mxu1 %v8002_v19  ;;  %7195 = vmatprep.mubr.msk.f32.mxu1 %vm8003_vm1, %v9048_v32 }
 0xc95   :  { %7695 = vmatpush3.bf16.msra.mxu0 %v8207_v48 }
 0xc96   :  { %7696 = vmatprep.subr.bf16.mxu0 %v8002_v19  ;;  %7707 = vmatpush3.bf16.msra.mxu1 %v8354_v24 }
 0xc97   :  { %7708 = vmatprep.subr.bf16.mxu1 %v8002_v19 }
 0xc98   :  { %7174 = vmatmul.mubr.msk.f32.vlgmr.msra.gmra.mrb[60].mxu0 %vm412_vm2, %v8804_v52 }
 0xc99   :  { %7698 = vmatpush3.bf16.msra.mxu0 %v8228_v51  ;;  %7184 = vmatprep.mubr.msk.f32.mxu0 %vm8003_vm1, %v9048_v32 }
 0xc9a   :  { %7699 = vmatprep.subr.bf16.mxu0 %v8002_v19 }
 0xc9d   :  { %7701 = vmatpush3.bf16.msra.mxu0 %v8247_v57 }
 0xc9e   :  { %7714 = vmatprep.subr.bf16.mxu0 %v8002_v19 }
 0xd63   :  { %v4710_v7 = vpop.f32.mrb[58].mxu0  ;;  %v4780_v37 = vpop.f32.mrb[54].mxu1 }
 0xd64   :  { %v4784_v38 = vadd.f32 %v4710_v7, %v8269_v4  ;;  %v4791_v40 = vadd.f32 %v4780_v37, %v8303_v46  ;;  %v7153_v11 = vpop.f32.mrb[59].mxu0  ;;  %v7164_v49 = vpop.f32.mrb[55].mxu1 }
 0xd66   :  { %v6060_v50 = vmul.f32 -1.442695, %v4784_v38  ;;  %v6061_v10 = vmul.f32 -1.442695, %v4791_v40 }
 0xd68   :  { %7953 = vpow2.f32 %v6060_v50 }
 0xd69   :  { %7955 = vpow2.f32 %v6061_v10 }
 0xd6b   :  { %v4864_v8 = vpop.f32.mrb[60].mxu0 }
 0xd6c   :  { %v7175_v0 = vpop.f32.mrb[61].mxu0  ;;  %v4865_v63 = vadd.f32 %v8799_v62, %v4864_v8 }
 0xd72   :  { %v7954_v34 = vpop.eup %7953 }
 0xd73   :  { %v4788_v1 = vadd.f32 1.0, %v7954_v34  ;;  %v7956_v58 = vpop.eup %7955 }
 0xd74   :  { %v4795_v9 = vadd.f32 1.0, %v7956_v58 }
 0xd75   :  { %7957 = vrcp.f32 %v4788_v1 }
 0xd7f   :  { %v7958_v43 = vpop.eup %7957 }
 0xd80   :  { %v4868_v29 = vmul.f32 %v7958_v43, %v4865_v63 }
 0xd82   :  { %v4869_v4 = vadd.f32 %v4868_v29, %v8311_v59 }
 0xd84   :  { %7959 = vtanh.f32 %v4869_v4 }
 0xd85   :  { %7961 = vrcp.f32 %v4795_v9 }
 0xd8e   :  { %v7960_v46 = vpop.eup %7959 }
 0xd8f   :  { %v4871_v3 = vsub.f32 %v8804_v52, %v7960_v46  ;;  %v7962_v13 = vpop.eup %7961 }
 0xd91   :  { %v4872_v39 = vmul.f32 %v7962_v13, %v4871_v3 }
 0xd93   :  { %v8910_v21 = vadd.f32 %v7960_v46, %v4872_v39 }
 0xd95   :  { %7185 = vmatmul.mubr.msk.f32.vlgmr.msra.gmra.mrb[56].mxu0 %vm412_vm2, %v8910_v21  ;;  %7196 = vmatmul.mubr.msk.f32.vlgmr.msra.gmra.mrb[52].mxu1 %vm412_vm2, %v8910_v21 }
 0xd96   :  { %7710 = vmatpush3.bf16.msra.mxu1 %v8236_v54  ;;  %7716 = vmatpush3.bf16.msra.mxu0 %v8341_v14 }
 0xd97   :  { %7711 = vmatprep.subr.bf16.mxu1 %v8002_v19  ;;  %7717 = vmatprep.subr.bf16.mxu0 %v8002_v19 }
 0xd98   :  { %7206 = vmatprep.mubr.msk.f32.mxu1 %vm8003_vm1, %v9048_v32  ;;  %7217 = vmatprep.mubr.msk.f32.mxu0 %vm8003_vm1, %v9048_v32 }
 0xd9a   :  { %7713 = vmatpush3.bf16.msra.mxu1 %v8256_v60  ;;  %7719 = vmatpush3.bf16.msra.mxu0 %v8360_v27 }
 0xd9b   :  { %7720 = vmatprep.subr.bf16.mxu1 %v8002_v19  ;;  %7726 = vmatprep.subr.bf16.mxu0 %v8002_v19 }
 0xd9d   :  { %7207 = vmatmul.mubr.msk.f32.vlgmr.msra.gmra.mrb[56].mxu1 %vm412_vm2, %v8910_v21  ;;  %7218 = vmatmul.mubr.msk.f32.vlgmr.msra.gmra.mrb[62].mxu0 %vm412_vm2, %v8863_v5 }
 0xd9e   :  { %7722 = vmatpush3.bf16.msra.mxu1 %v8082_v18  ;;  %7728 = vmatpush3.bf16.msra.mxu0 %v8144_v33 }
 0xd9f   :  { %7723 = vmatprep.subr.bf16.mxu1 %v8002_v19  ;;  %7729 = vmatprep.subr.bf16.mxu0 %v8002_v19 }
 0xda0   :  { %7228 = vmatprep.mubr.msk.f32.mxu1 %vm8003_vm1, %v9048_v32  ;;  %7239 = vmatprep.mubr.msk.f32.mxu0 %vm8003_vm1, %v9048_v32 }
 0xda2   :  { %7725 = vmatpush3.bf16.msra.mxu1 %v8106_v25  ;;  %7731 = vmatpush3.bf16.msra.mxu0 %v8159_v36 }
 0xda3   :  { %7732 = vmatprep.subr.bf16.mxu1 %v8002_v19  ;;  %7738 = vmatprep.subr.bf16.mxu0 %v8002_v19 }
 0xe68   :  { %v4943_v18 = vpop.f32.mrb[56].mxu0  ;;  %v5013_v33 = vpop.f32.mrb[52].mxu1 }
 0xe69   :  { %v4944_v59 = vadd.f32 %v8841_v55, %v4943_v18  ;;  %v7186_v52 = vpop.f32.mrb[57].mxu0  ;;  %v7197_v12 = vpop.f32.mrb[53].mxu1  ;;  %v5014_v22 = vadd.f32 %v8847_v28, %v5013_v33 }
 0xe6b   :  { %v6066_v23 = vmul.f32 -1.442695, %v4944_v59  ;;  %v6067_v20 = vmul.f32 -1.442695, %v5014_v22 }
 0xe6d   :  { %7963 = vpow2.f32 %v6066_v23 }
 0xe6e   :  { %7965 = vpow2.f32 %v6067_v20 }
 0xe70   :  { %v5083_v53 = vpop.f32.mrb[56].mxu1  ;;  %v5167_v61 = vpop.f32.mrb[62].mxu0 }
 0xe71   :  { %v7208_v17 = vpop.f32.mrb[57].mxu1  ;;  %v7219_v25 = vpop.f32.mrb[63].mxu0  ;;  %v5168_v45 = vadd.f32 %v8853_v35, %v5167_v61  ;;  %v5084_v37 = vadd.f32 %v8859_v16, %v5083_v53 }
 0xe77   :  { %v7964_v36 = vpop.eup %7963 }
 0xe78   :  { %v5091_v15 = vadd.f32 1.0, %v7964_v36  ;;  %v7966_v30 = vpop.eup %7965 }
 0xe79   :  { %v5098_v40 = vadd.f32 1.0, %v7966_v30 }
 0xe7a   :  { %7967 = vrcp.f32 %v5091_v15 }
 0xe84   :  { %v7968_v7 = vpop.eup %7967 }
 0xe85   :  { %v5171_v38 = vmul.f32 %v7968_v7, %v5168_v45 }
 0xe87   :  { %v5172_v11 = vadd.f32 %v5171_v38, %v5084_v37 }
 0xe89   :  { %7969 = vtanh.f32 %v5172_v11 }
 0xe8a   :  { %7971 = vrcp.f32 %v5098_v40 }
 0xe93   :  { %v7970_v49 = vpop.eup %7969 }
 0xe94   :  { %v5174_v50 = vsub.f32 %v8863_v5, %v7970_v49  ;;  %v7972_v8 = vpop.eup %7971 }
 0xe96   :  { %v5175_v0 = vmul.f32 %v7972_v8, %v5174_v50 }
 0xe98   :  { %v8949_v10 = vadd.f32 %v7970_v49, %v5175_v0 }
 0xe9a   :  { %7229 = vmatmul.mubr.msk.f32.vlgmr.msra.gmra.mrb[58].mxu1 %vm412_vm2, %v8949_v10  ;;  %7240 = vmatmul.mubr.msk.f32.vlgmr.msra.gmra.mrb[64].mxu0 %vm412_vm2, %v8949_v10 }
 0xe9b   :  { %7734 = vmatpush3.bf16.msra.mxu1 %v8113_v26  ;;  %7740 = vmatpush3.bf16.msra.mxu0 %v8181_v41 }
 0xe9c   :  { %7735 = vmatprep.subr.bf16.mxu1 %v8002_v19  ;;  %7741 = vmatprep.subr.bf16.mxu0 %v8002_v19 }
 0xe9d   :  { %7250 = vmatprep.mubr.msk.f32.mxu1 %vm8003_vm1, %v9048_v32  ;;  %7261 = vmatprep.mubr.msk.f32.mxu0 %vm8003_vm1, %v9048_v32 }
 0xe9f   :  { %7737 = vmatpush3.bf16.msra.mxu1 %v8136_v31  ;;  %7743 = vmatpush3.bf16.msra.mxu0 %v8201_v47 }
 0xea0   :  { %7744 = vmatprep.subr.bf16.mxu1 %v8002_v19  ;;  %7756 = vmatprep.subr.bf16.mxu0 %v8002_v19 }
 0xea2   :  { %7251 = vmatmul.mubr.msk.f32.vlgmr.msra.gmra.mrb[60].mxu1 %vm412_vm2, %v8910_v21  ;;  %7262 = vmatmul.mubr.msk.f32.vlgmr.msra.gmra.mrb[66].mxu0 %vm412_vm2, %v8910_v21 }
 0xea3   :  { %7746 = vmatpush3.bf16.msra.mxu1 %v8190_v44  ;;  %7272 = vmatprep.mubr.msk.f32.mxu1 %vm8003_vm1, %v9048_v32 }
 0xea4   :  { %7747 = vmatprep.subr.bf16.mxu1 %v8002_v19  ;;  %7758 = vmatpush3.bf16.msra.mxu0 %v8331_v6 }
 0xea5   :  { %7759 = vmatprep.subr.bf16.mxu0 %v8002_v19  ;;  %7294 = vmatprep.mubr.msk.f32.mxu0 %vm8003_vm1, %v9048_v32 }
 0xea7   :  { %7749 = vmatpush3.bf16.msra.mxu1 %v8207_v48 }
 0xea8   :  { %7750 = vmatprep.subr.bf16.mxu1 %v8002_v19  ;;  %7761 = vmatpush3.bf16.msra.mxu0 %v8354_v24 }
 0xea9   :  { %7762 = vmatprep.subr.bf16.mxu0 %v8002_v19 }
 0xeaa   :  { %7273 = vmatmul.mubr.msk.f32.vlgmr.msra.gmra.mrb[62].mxu1 %vm412_vm2, %v8910_v21 }
 0xeab   :  { %7752 = vmatpush3.bf16.msra.mxu1 %v8228_v51  ;;  %7283 = vmatprep.mubr.msk.f32.mxu1 %vm8003_vm1, %v9048_v32 }
 0xeac   :  { %7753 = vmatprep.subr.bf16.mxu1 %v8002_v19 }
 0xeaf   :  { %7755 = vmatpush3.bf16.msra.mxu1 %v8247_v57 }
 0xeb0   :  { %7768 = vmatprep.subr.bf16.mxu1 %v8002_v19 }
 0xf75   :  { %v5386_v26 = vpop.f32.mrb[60].mxu1  ;;  %v5456_v31 = vpop.f32.mrb[66].mxu0 }
 0xf76   :  { %v5460_v41 = vadd.f32 %v5386_v26, %v8267_v2  ;;  %v5467_v44 = vadd.f32 %v5456_v31, %v8299_v42  ;;  %v7252_v47 = vpop.f32.mrb[61].mxu1  ;;  %v7263_v48 = vpop.f32.mrb[67].mxu0 }
 0xf78   :  { %v6073_v6 = vmul.f32 -1.442695, %v5460_v41  ;;  %v6074_v5 = vmul.f32 -1.442695, %v5467_v44 }
 0xf7a   :  { %7973 = vpow2.f32 %v6073_v6 }
 0xf7b   :  { %7975 = vpow2.f32 %v6074_v5 }
 0xf7d   :  { %v5540_v51 = vpop.f32.mrb[62].mxu1 }
 0xf7e   :  { %v7274_v24 = vpop.f32.mrb[63].mxu1  ;;  %v5541_v58 = vadd.f32 %v8799_v62, %v5540_v51 }
 0xf84   :  { %v7974_v34 = vpop.eup %7973 }
 0xf85   :  { %v5464_v1 = vadd.f32 1.0, %v7974_v34  ;;  %v7976_v57 = vpop.eup %7975 }
 0xf86   :  { %v5471_v29 = vadd.f32 1.0, %v7976_v57 }
 0xf87   :  { %7977 = vrcp.f32 %v5464_v1 }
 0xf91   :  { %v7978_v63 = vpop.eup %7977 }
 0xf92   :  { %v5544_v43 = vmul.f32 %v7978_v63, %v5541_v58 }
 0xf94   :  { %v5545_v2 = vadd.f32 %v5544_v43, %v8309_v56  ;;  %v5855_v56 = vld [vmem:[%s9042_s1 + $0x160] sm:$0xff] }
 0xf96   :  { %7979 = vtanh.f32 %v5545_v2 }
 0xf97   :  { %7981 = vrcp.f32 %v5471_v29 }
 0xfa0   :  { %v7980_v42 = vpop.eup %7979 }
 0xfa1   :  { %v5547_v9 = vsub.f32 %v8910_v21, %v7980_v42  ;;  %v7982_v4 = vpop.eup %7981 }
 0xfa3   :  { %v5548_v46 = vmul.f32 %v7982_v4, %v5547_v9 }
 0xfa5   :  { %v5549_v3 = vadd.f32 %v7980_v42, %v5548_v46 }
 0xfa7   :  { %7284 = vmatmul.mubr.msk.f32.vlgmr.msra.gmra.mrb[58].mxu1 %vm412_vm2, %v5549_v3  ;;  %7295 = vmatmul.mubr.msk.f32.vlgmr.msra.gmra.mrb[64].mxu0 %vm412_vm2, %v5549_v3 }
 0xfa8   :  { %7764 = vmatpush3.bf16.msra.mxu0 %v8236_v54  ;;  %7770 = vmatpush3.bf16.msra.mxu1 %v8341_v14  ;;  %v5853_v54 = vld [vmem:[%s9042_s1 + $0x150] sm:$0xff] }
 0xfa9   :  { %7765 = vmatprep.subr.bf16.mxu0 %v8002_v19  ;;  %7771 = vmatprep.subr.bf16.mxu1 %v8002_v19 }
 0xfaa   :  { %7305 = vmatprep.mubr.msk.f32.mxu0 %vm8003_vm1, %v9048_v32  ;;  %7316 = vmatprep.mubr.msk.f32.mxu1 %vm8003_vm1, %v9048_v32 }
 0xfac   :  { %7767 = vmatpush3.bf16.msra.mxu0 %v8256_v60  ;;  %7773 = vmatpush3.bf16.msra.mxu1 %v8360_v27  ;;  %v5854_v60 = vld [vmem:[%s9042_s1 + $0x158] sm:$0xff]  ;;  %v5856_v27 = vld [vmem:[%s9042_s1 + $0x168] sm:$0xff] }
 0xfad   :  { %7774 = vmatprep.subr.bf16.mxu0 %v8002_v19  ;;  %v7775_v14 = vpack.c.bf16 %v5854_v60, %v5853_v54  ;;  %v7778_v62 = vpack.c.bf16 %v5856_v27, %v5855_v56 }
 0xfaf   :  { %7306 = vmatmul.mubr.msk.f32.vlgmr.msra.gmra.mrb[68].mxu0 %vm412_vm2, %v5549_v3  ;;  %7317 = vmatmul.mubr.msk.f32.vlgmr.msra.gmra.mrb[64].mxu1 %vm412_vm2, %v8949_v10 }
 0xfb0   :  { %7327 = vmatprep.mubr.msk.f32.mxu0 %vm8003_vm1, %v9048_v32  ;;  %7776 = vmatpush3.bf16.msra.mxu0 %v7775_v14 }
 0xfb1   :  { %7777 = vmatprep.subr.bf16.mxu0 %v8002_v19 }
 0xfb4   :  { %7779 = vmatpush3.bf16.msra.mxu0 %v7778_v62 }
0x107a   :  { %v5619_v32 = vpop.f32.mrb[58].mxu1  ;;  %v5689_v13 = vpop.f32.mrb[64].mxu0 }
0x107b   :  { %v5620_v39 = vadd.f32 %v8841_v55, %v5619_v32  ;;  %v7285_v21 = vpop.f32.mrb[59].mxu1  ;;  %v7296_v18 = vpop.f32.mrb[65].mxu0  ;;  %v5690_v12 = vadd.f32 %v8847_v28, %v5689_v13 }
0x107d   :  { %v6079_v33 = vmul.f32 -1.442695, %v5620_v39  ;;  %v6080_v61 = vmul.f32 -1.442695, %v5690_v12 }
0x107f   :  { %7983 = vpow2.f32 %v6079_v33 }
0x1080   :  { %7985 = vpow2.f32 %v6080_v61 }
0x1082   :  { %v5759_v59 = vpop.f32.mrb[68].mxu0  ;;  %v5843_v52 = vpop.f32.mrb[64].mxu1 }
0x1083   :  { %v7307_v23 = vpop.f32.mrb[69].mxu0  ;;  %v7318_v53 = vpop.f32.mrb[65].mxu1  ;;  %v5844_v25 = vadd.f32 %v8853_v35, %v5843_v52  ;;  %v5760_v55 = vadd.f32 %v8859_v16, %v5759_v59  ;;  %v6082_v35 = vld [vmem:[%s9044_s2 + $0x8] ss:$0 sm:$0xff] }
0x1089   :  { %v7984_v22 = vpop.eup %7983 }
0x108a   :  { %v5767_v17 = vadd.f32 1.0, %v7984_v22  ;;  %v7986_v19 = vpop.eup %7985 }
0x108b   :  { %v5774_v15 = vadd.f32 1.0, %v7986_v19 }
0x108c   :  { %7987 = vrcp.f32 %v5767_v17 }
0x1096   :  { %v7988_v20 = vpop.eup %7987 }
0x1097   :  { %v5847_v36 = vmul.f32 %v7988_v20, %v5844_v25 }
0x1099   :  { %v5848_v30 = vadd.f32 %v5847_v36, %v5760_v55 }
0x109b   :  { %7989 = vtanh.f32 %v5848_v30 }
0x109c   :  { %7991 = vrcp.f32 %v5774_v15 }
0x10a5   :  { %v7990_v45 = vpop.eup %7989 }
0x10a6   :  { %v5850_v28 = vsub.f32 %v8949_v10, %v7990_v45  ;;  %v7992_v7 = vpop.eup %7991 }
0x10a8   :  { %v5851_v37 = vmul.f32 %v7992_v7, %v5850_v28 }
0x10aa   :  { %v5852_v38 = vadd.f32 %v7990_v45, %v5851_v37 }
0x10ac   :  { %7328 = vmatmul.mubr.msk.f32.vlgmr.msra.gmra.mrb[70].mxu0 %vm412_vm2, %v5852_v38 }
0x117f   :  { %v5931_v40 = vpop.f32.mrb[70].mxu0 }
0x1180   :  { %v5932_v16 = vadd.f32 %v6082_v35, %v5931_v40  ;;  %v7329_v11 = vpop.f32.mrb[71].mxu0 }
0x1182   :  { %v5936_v49 = vsel %vm5935_vm3, %v5932_v16, -inf }
0x1183   :  { %5937 = vmax.xlane.f32.xlu0 %v5936_v49 }
0x1210   :  { %v5938_v50 = vpop.xlane.xlu0 %5937 }
0x1211   :  { %v5939_v8 = vsub.f32 %v5932_v16, %v5938_v50 }
0x1213   :  { %v5940_v0 = vmul.f32 1.442695, %v5939_v8 }
0x1215   :  { %7993 = vpow2.f32 %v5940_v0 }
0x121f   :  { %v7994_v10 = vpop.eup %7993 }
0x1220   :  { %v5942_v26 = vsel %vm5935_vm3, %v7994_v10, 0.0 }
0x1221   :  { %5943 = vadd.xlane.f32.xlu0 %v5942_v26 }
0x12ae   :  { %v5944_v31 = vpop.xlane.xlu0 %5943 }
0x12af   :  { %7995 = vrcp.f32 %v5944_v31 }
0x12b9   :  { %v7996_v41 = vpop.eup %7995 }
0x12ba   :  { %v5946_v44 = vmul.f32 %v7996_v41, %v7994_v10 }
0x12bc   :  { %5947 = vst.msk [vmem:[%s9045_s3] sm:$0xff] %vm5935_vm3, %v5946_v44 }

</bundles_post_ra>
